<compile_context>
chip_gen: v7x
topology: tpu7x:2x2x1
jax: 0.10.0
libtpu: 0.0.40
codegen_flags: <defaults>
</compile_context>

<pallas_src>
import jax
import jax.numpy as jnp
from jax.experimental import pallas as pl
from jax.experimental.pallas import tpu as pltpu

_LANE = 128


def _round_up(x, m):
    return (x + m - 1) // m * m


def _mlp_kernel(x_ref, w1_ref, b1_ref, w2_ref, b2_ref, w3_ref, b3_ref, o_ref):
    x = x_ref[...]                                                     # (TB, inp)
    h1 = jnp.maximum(
        b1_ref[...] + jnp.dot(x, w1_ref[...], preferred_element_type=jnp.float32),
        0.0)                                                           # (TB, 128)
    h2 = jnp.maximum(
        b2_ref[...] + jnp.dot(h1, w2_ref[...], preferred_element_type=jnp.float32),
        0.0)                                                           # (TB, 128)
    y = b3_ref[...] + jnp.dot(h2, w3_ref[...], preferred_element_type=jnp.float32)
    o_ref[...] = y.astype(o_ref.dtype)                                 # (TB, outp_pad)


def tinymlp_forward(x, params, *, block_b=2048, vmem_budget=28 * 1024 * 1024,
                    use_bf16=False):
    """x: (B, C, H, W). params: dict w1,b1,w2,b2,w3,b3 with w_i stored (in, out)."""
    B = x.shape[0]
    in_dt = jnp.bfloat16 if use_bf16 else jnp.float32
    in_bytes = jnp.dtype(in_dt).itemsize

    x2d = x.reshape(B, -1).astype(in_dt)              # nn.Flatten()
    inp = x2d.shape[1]

    w1, b1 = params["w1"], params["b1"]               # (inp, 64), (1, 64)
    w2, b2 = params["w2"], params["b2"]               # (64, 32),  (1, 32)
    w3, b3 = params["w3"], params["b3"]               # (32, outp),(1, outp)
    h1, h2, outp = w1.shape[1], w2.shape[1], w3.shape[1]

    h1p = _round_up(h1, _LANE)                        # 64  -> 128
    h2p = _round_up(h2, _LANE)                        # 32  -> 128
    outp_p = _round_up(outp, _LANE)                   # 10  -> 128

    # Lane-pad the small operands with zeros (exact: zeros flow through as zeros).
    w1p = jnp.pad(w1.astype(in_dt), ((0, 0), (0, h1p - h1)))
    b1p = jnp.pad(b1.astype(jnp.float32), ((0, 0), (0, h1p - h1)))
    w2p = jnp.pad(w2.astype(in_dt), ((0, h1p - h1), (0, h2p - h2)))
    b2p = jnp.pad(b2.astype(jnp.float32), ((0, 0), (0, h2p - h2)))
    w3p = jnp.pad(w3.astype(in_dt), ((0, h2p - h2), (0, outp_p - outp)))
    b3p = jnp.pad(b3.astype(jnp.float32), ((0, 0), (0, outp_p - outp)))

    # ---- Honest VMEM accounting -------------------------------------------
    # x tile (double-buffered) + out tile (double-buffered) + f32 h1/h2/y
    # intermediates + weights/biases (counted x2: worst case if Buffered(1) is
    # unavailable) + headroom for Mosaic internal scratch.
    wb_bytes = (in_bytes * (inp * h1p + h1p * h2p + h2p * outp_p)
                + 4 * (h1p + h2p + outp_p))
    per_row_bytes = (2 * inp * in_bytes            # x tile, double-buffered
                     + 2 * outp_p * 4              # out tile, double-buffered
                     + (h1p + h2p + outp_p) * 4)   # h1 / h2 / y intermediates
    tb_cap = (vmem_budget - 2 * wb_bytes) // per_row_bytes
    tb_cap = max(8, (tb_cap // 8) * 8)
    tb = min(block_b, tb_cap, _round_up(B, 8))
    tb = max(8, (tb // 8) * 8)

    headroom = 4 * 1024 * 1024
    est_bytes = tb * per_row_bytes + 2 * wb_bytes + headroom
    vmem_limit = int(min(max(est_bytes, 16 * 1024 * 1024), 100 * 1024 * 1024))

    # Ragged final block instead of batch padding: OOB reads are unspecified but
    # row-local; OOB output-row writes are dropped. No cross-row reductions in
    # the kernel, so this is exact.
    grid = (pl.cdiv(B, tb),)

    def run(single_buffer_weights):
        if single_buffer_weights and hasattr(pl, "Buffered"):
            def wspec(shape):
                # Constant index_map -> DMA'd once; no need for a second buffer.
                return pl.BlockSpec(shape, lambda i: (0, 0),
                                    pipeline_mode=pl.Buffered(1))
        else:
            def wspec(shape):
                return pl.BlockSpec(shape, lambda i: (0, 0))

        return pl.pallas_call(
            _mlp_kernel,
            out_shape=jax.ShapeDtypeStruct((B, outp_p), jnp.float32),
            grid=grid,
            in_specs=[
                pl.BlockSpec((tb, inp), lambda i: (i, 0)),   # x: batch-tiled
                wspec((inp, h1p)),                           # w1: resident
                wspec((1, h1p)),                             # b1
                wspec((h1p, h2p)),                           # w2
                wspec((1, h2p)),                             # b2
                wspec((h2p, outp_p)),                        # w3
                wspec((1, outp_p)),                          # b3
            ],
            out_specs=pl.BlockSpec((tb, outp_p), lambda i: (i, 0)),
            compiler_params=pltpu.CompilerParams(
                dimension_semantics=("parallel",),
                vmem_limit_bytes=vmem_limit),
        )(x2d, w1p, b1p, w2p, b2p, w3p, b3p)

    try:
        out_padded = run(True)
    except Exception:
        # Fallback if pipeline_mode=pl.Buffered(1) is not supported by this JAX.
        out_padded = run(False)

    # Lane padding keeps the in-kernel store full-lane; slice the real columns
    # out here (skip this slice if a downstream consumer accepts (B, 128)).
    return out_padded[:, :outp]


def init_params(key, inp, outp):
    """Deterministic init matching torch.nn.Linear's default (uniform +-1/sqrt(fan_in))."""
    ks = jax.random.split(key, 6)

    def linear(kw, kb, fan_in, fan_out):
        bound = 1.0 / jnp.sqrt(fan_in)
        # stored as (in, out) so the kernel does x @ W
        w = jax.random.uniform(kw, (fan_in, fan_out), jnp.float32, -bound, bound)
        b = jax.random.uniform(kb, (1, fan_out), jnp.float32, -bound, bound)
        return w, b

    w1, b1 = linear(ks[0], ks[1], inp, 64)
    w2, b2 = linear(ks[2], ks[3], 64, 32)
    w3, b3 = linear(ks[4], ks[5], 32, outp)
    return {"w1": w1, "b1": b1, "w2": w2, "b2": b2, "w3": w3, "b3": b3}


if __name__ == "__main__":
    key = jax.random.PRNGKey(0)
    k_x, k_p = jax.random.split(key)

    B, C, H, W = 2, 4, 16, 16          # -> inp = 4*16*16 = 1024
    inp = C * H * W
    outp = 10

    x = jax.random.normal(k_x, (B, C, H, W), jnp.float32)
    params = init_params(k_p, inp, outp)

    out = tinymlp_forward(x, params)
    jax.block_until_ready(out)

    # pure-JAX reference check
    x2d = x.reshape(B, -1)
    h1 = jnp.maximum(x2d @ params["w1"] + params["b1"], 0.0)
    h2 = jnp.maximum(h1 @ params["w2"] + params["b2"], 0.0)
    ref = h2 @ params["w3"] + params["b3"]
    assert out.shape == (B, outp)
    assert jnp.allclose(out, ref, atol=1e-4, rtol=1e-5)

    print("KERNEL_OK")
</pallas_src>

<mosaic_0001>
module attributes {stable_mosaic.version = 11 : i64} {
  func.func @_mlp_kernel(%arg0: i32, %arg1: memref<8x1024xf32, #tpu.memory_space<vmem>>, %arg2: memref<1024x128xf32, #tpu.memory_space<vmem>>, %arg3: memref<1x128xf32, #tpu.memory_space<vmem>>, %arg4: memref<128x128xf32, #tpu.memory_space<vmem>>, %arg5: memref<1x128xf32, #tpu.memory_space<vmem>>, %arg6: memref<128x128xf32, #tpu.memory_space<vmem>>, %arg7: memref<1x128xf32, #tpu.memory_space<vmem>>, %arg8: memref<8x128xf32, #tpu.memory_space<vmem>>) attributes {dimension_semantics = [#tpu.dimension_semantics<parallel>], iteration_bounds = array<i64: 1>, scalar_prefetch = 0 : i64, scratch_operands = 0 : i64, tpu.core_type = #tpu.core_type<tc>, window_params = [{transform_indices = @transform_0, window_bounds = array<i64: 8, 1024>}, {pipeline_mode = #tpu.pipeline_mode<synchronous>, transform_indices = @transform_1, window_bounds = array<i64: 1024, 128>}, {pipeline_mode = #tpu.pipeline_mode<synchronous>, transform_indices = @transform_2, window_bounds = array<i64: 1, 128>}, {pipeline_mode = #tpu.pipeline_mode<synchronous>, transform_indices = @transform_3, window_bounds = array<i64: 128, 128>}, {pipeline_mode = #tpu.pipeline_mode<synchronous>, transform_indices = @transform_4, window_bounds = array<i64: 1, 128>}, {pipeline_mode = #tpu.pipeline_mode<synchronous>, transform_indices = @transform_5, window_bounds = array<i64: 128, 128>}, {pipeline_mode = #tpu.pipeline_mode<synchronous>, transform_indices = @transform_6, window_bounds = array<i64: 1, 128>}, {transform_indices = @transform_7, window_bounds = array<i64: 8, 128>}]} {
    %c0 = arith.constant 0 : index
    %c0_0 = arith.constant 0 : index
    %0 = vector.load %arg1[%c0, %c0_0] : memref<8x1024xf32, #tpu.memory_space<vmem>>, vector<8x1024xf32>
    %c0_1 = arith.constant 0 : index
    %c0_2 = arith.constant 0 : index
    %1 = vector.load %arg3[%c0_1, %c0_2] : memref<1x128xf32, #tpu.memory_space<vmem>>, vector<1x128xf32>
    %c0_3 = arith.constant 0 : index
    %c0_4 = arith.constant 0 : index
    %2 = vector.load %arg2[%c0_3, %c0_4] : memref<1024x128xf32, #tpu.memory_space<vmem>>, vector<1024x128xf32>
    %cst = arith.constant dense<0.000000e+00> : vector<8x128xf32>
    %3 = tpu.matmul %0, %2, %cst {dimension_numbers = #tpu.dot_dimension_numbers<[1], [0], [0], [1], [0, 0, 1, 1], [], []>} : vector<8x1024xf32>, vector<1024x128xf32>, vector<8x128xf32> -> vector<8x128xf32>
    %4 = vector.broadcast %1 : vector<1x128xf32> to vector<8x128xf32>
    %5 = arith.addf %4, %3 : vector<8x128xf32>
    %cst_5 = arith.constant 0.000000e+00 : f32
    %6 = vector.broadcast %cst_5 : f32 to vector<8x128xf32>
    %7 = arith.maximumf %5, %6 : vector<8x128xf32>
    %c0_6 = arith.constant 0 : index
    %c0_7 = arith.constant 0 : index
    %8 = vector.load %arg5[%c0_6, %c0_7] : memref<1x128xf32, #tpu.memory_space<vmem>>, vector<1x128xf32>
    %c0_8 = arith.constant 0 : index
    %c0_9 = arith.constant 0 : index
    %9 = vector.load %arg4[%c0_8, %c0_9] : memref<128x128xf32, #tpu.memory_space<vmem>>, vector<128x128xf32>
    %cst_10 = arith.constant dense<0.000000e+00> : vector<8x128xf32>
    %10 = tpu.matmul %7, %9, %cst_10 {dimension_numbers = #tpu.dot_dimension_numbers<[1], [0], [0], [1], [0, 0, 1, 1], [], []>} : vector<8x128xf32>, vector<128x128xf32>, vector<8x128xf32> -> vector<8x128xf32>
    %11 = vector.broadcast %8 : vector<1x128xf32> to vector<8x128xf32>
    %12 = arith.addf %11, %10 : vector<8x128xf32>
    %cst_11 = arith.constant 0.000000e+00 : f32
    %13 = vector.broadcast %cst_11 : f32 to vector<8x128xf32>
    %14 = arith.maximumf %12, %13 : vector<8x128xf32>
    %c0_12 = arith.constant 0 : index
    %c0_13 = arith.constant 0 : index
    %15 = vector.load %arg7[%c0_12, %c0_13] : memref<1x128xf32, #tpu.memory_space<vmem>>, vector<1x128xf32>
    %c0_14 = arith.constant 0 : index
    %c0_15 = arith.constant 0 : index
    %16 = vector.load %arg6[%c0_14, %c0_15] : memref<128x128xf32, #tpu.memory_space<vmem>>, vector<128x128xf32>
    %cst_16 = arith.constant dense<0.000000e+00> : vector<8x128xf32>
    %17 = tpu.matmul %14, %16, %cst_16 {dimension_numbers = #tpu.dot_dimension_numbers<[1], [0], [0], [1], [0, 0, 1, 1], [], []>} : vector<8x128xf32>, vector<128x128xf32>, vector<8x128xf32> -> vector<8x128xf32>
    %18 = vector.broadcast %15 : vector<1x128xf32> to vector<8x128xf32>
    %19 = arith.addf %18, %17 : vector<8x128xf32>
    %c0_17 = arith.constant 0 : index
    %c0_18 = arith.constant 0 : index
    %20 = vector.load %arg8[%c0_17, %c0_18] : memref<8x128xf32, #tpu.memory_space<vmem>>, vector<8x128xf32>
    tpu.vector_store %arg8[%c0_17, %c0_18], %19 {strides = array<i32>} : memref<8x128xf32, #tpu.memory_space<vmem>>, vector<8x128xf32>,
    return
  }
  func.func @transform_0(%arg0: i32) -> (i32, i32) {
    %c0_i32 = arith.constant 0 : i32
    %c0_i32_0 = arith.constant 0 : i32
    return %arg0, %c0_i32 : i32, i32
  }
  func.func @transform_1(%arg0: i32) -> (i32, i32) {
    %c0_i32 = arith.constant 0 : i32
    %c0_i32_0 = arith.constant 0 : i32
    %c0_i32_1 = arith.constant 0 : i32
    return %c0_i32, %c0_i32_0 : i32, i32
  }
  func.func @transform_2(%arg0: i32) -> (i32, i32) {
    %c0_i32 = arith.constant 0 : i32
    %c0_i32_0 = arith.constant 0 : i32
    %c0_i32_1 = arith.constant 0 : i32
    return %c0_i32, %c0_i32_0 : i32, i32
  }
  func.func @transform_3(%arg0: i32) -> (i32, i32) {
    %c0_i32 = arith.constant 0 : i32
    %c0_i32_0 = arith.constant 0 : i32
    %c0_i32_1 = arith.constant 0 : i32
    return %c0_i32, %c0_i32_0 : i32, i32
  }
  func.func @transform_4(%arg0: i32) -> (i32, i32) {
    %c0_i32 = arith.constant 0 : i32
    %c0_i32_0 = arith.constant 0 : i32
    %c0_i32_1 = arith.constant 0 : i32
    return %c0_i32, %c0_i32_0 : i32, i32
  }
  func.func @transform_5(%arg0: i32) -> (i32, i32) {
    %c0_i32 = arith.constant 0 : i32
    %c0_i32_0 = arith.constant 0 : i32
    %c0_i32_1 = arith.constant 0 : i32
    return %c0_i32, %c0_i32_0 : i32, i32
  }
  func.func @transform_6(%arg0: i32) -> (i32, i32) {
    %c0_i32 = arith.constant 0 : i32
    %c0_i32_0 = arith.constant 0 : i32
    %c0_i32_1 = arith.constant 0 : i32
    return %c0_i32, %c0_i32_0 : i32, i32
  }
  func.func @transform_7(%arg0: i32) -> (i32, i32) {
    %c0_i32 = arith.constant 0 : i32
    %c0_i32_0 = arith.constant 0 : i32
    return %arg0, %c0_i32 : i32, i32
  }
}

module attributes {stable_mosaic.version = 11 : i64} {
  func.func @_mlp_kernel(%arg0: i32, %arg1: memref<8x1024xf32, #tpu.memory_space<vmem>>, %arg2: memref<1024x128xf32, #tpu.memory_space<vmem>>, %arg3: memref<1x128xf32, #tpu.memory_space<vmem>>, %arg4: memref<128x128xf32, #tpu.memory_space<vmem>>, %arg5: memref<1x128xf32, #tpu.memory_space<vmem>>, %arg6: memref<128x128xf32, #tpu.memory_space<vmem>>, %arg7: memref<1x128xf32, #tpu.memory_space<vmem>>, %arg8: memref<8x128xf32, #tpu.memory_space<vmem>>) attributes {dimension_semantics = [#tpu.dimension_semantics<parallel>], iteration_bounds = array<i64: 1>, scalar_prefetch = 0 : i64, scratch_operands = 0 : i64, tpu.core_type = #tpu.core_type<tc>, window_params = [{transform_indices = @transform_0, window_bounds = array<i64: 8, 1024>}, {pipeline_mode = #tpu.pipeline_mode<synchronous>, transform_indices = @transform_1, window_bounds = array<i64: 1024, 128>}, {pipeline_mode = #tpu.pipeline_mode<synchronous>, transform_indices = @transform_2, window_bounds = array<i64: 1, 128>}, {pipeline_mode = #tpu.pipeline_mode<synchronous>, transform_indices = @transform_3, window_bounds = array<i64: 128, 128>}, {pipeline_mode = #tpu.pipeline_mode<synchronous>, transform_indices = @transform_4, window_bounds = array<i64: 1, 128>}, {pipeline_mode = #tpu.pipeline_mode<synchronous>, transform_indices = @transform_5, window_bounds = array<i64: 128, 128>}, {pipeline_mode = #tpu.pipeline_mode<synchronous>, transform_indices = @transform_6, window_bounds = array<i64: 1, 128>}, {transform_indices = @transform_7, window_bounds = array<i64: 8, 128>}]} {
    %c0 = arith.constant 0 : index
    %c0_0 = arith.constant 0 : index
    %0 = vector.load %arg1[%c0, %c0_0] : memref<8x1024xf32, #tpu.memory_space<vmem>>, vector<8x1024xf32>
    %c0_1 = arith.constant 0 : index
    %c0_2 = arith.constant 0 : index
    %1 = vector.load %arg3[%c0_1, %c0_2] : memref<1x128xf32, #tpu.memory_space<vmem>>, vector<1x128xf32>
    %c0_3 = arith.constant 0 : index
    %c0_4 = arith.constant 0 : index
    %2 = vector.load %arg2[%c0_3, %c0_4] : memref<1024x128xf32, #tpu.memory_space<vmem>>, vector<1024x128xf32>
    %cst = arith.constant dense<0.000000e+00> : vector<8x128xf32>
    %3 = tpu.matmul %0, %2, %cst {dimension_numbers = #tpu.dot_dimension_numbers<[1], [0], [0], [1], [0, 0, 1, 1], [], []>} : vector<8x1024xf32>, vector<1024x128xf32>, vector<8x128xf32> -> vector<8x128xf32>
    %4 = vector.broadcast %1 : vector<1x128xf32> to vector<8x128xf32>
    %5 = arith.addf %4, %3 : vector<8x128xf32>
    %cst_5 = arith.constant 0.000000e+00 : f32
    %6 = vector.broadcast %cst_5 : f32 to vector<8x128xf32>
    %7 = arith.maximumf %5, %6 : vector<8x128xf32>
    %c0_6 = arith.constant 0 : index
    %c0_7 = arith.constant 0 : index
    %8 = vector.load %arg5[%c0_6, %c0_7] : memref<1x128xf32, #tpu.memory_space<vmem>>, vector<1x128xf32>
    %c0_8 = arith.constant 0 : index
    %c0_9 = arith.constant 0 : index
    %9 = vector.load %arg4[%c0_8, %c0_9] : memref<128x128xf32, #tpu.memory_space<vmem>>, vector<128x128xf32>
    %cst_10 = arith.constant dense<0.000000e+00> : vector<8x128xf32>
    %10 = tpu.matmul %7, %9, %cst_10 {dimension_numbers = #tpu.dot_dimension_numbers<[1], [0], [0], [1], [0, 0, 1, 1], [], []>} : vector<8x128xf32>, vector<128x128xf32>, vector<8x128xf32> -> vector<8x128xf32>
    %11 = vector.broadcast %8 : vector<1x128xf32> to vector<8x128xf32>
    %12 = arith.addf %11, %10 : vector<8x128xf32>
    %cst_11 = arith.constant 0.000000e+00 : f32
    %13 = vector.broadcast %cst_11 : f32 to vector<8x128xf32>
    %14 = arith.maximumf %12, %13 : vector<8x128xf32>
    %c0_12 = arith.constant 0 : index
    %c0_13 = arith.constant 0 : index
    %15 = vector.load %arg7[%c0_12, %c0_13] : memref<1x128xf32, #tpu.memory_space<vmem>>, vector<1x128xf32>
    %c0_14 = arith.constant 0 : index
    %c0_15 = arith.constant 0 : index
    %16 = vector.load %arg6[%c0_14, %c0_15] : memref<128x128xf32, #tpu.memory_space<vmem>>, vector<128x128xf32>
    %cst_16 = arith.constant dense<0.000000e+00> : vector<8x128xf32>
    %17 = tpu.matmul %14, %16, %cst_16 {dimension_numbers = #tpu.dot_dimension_numbers<[1], [0], [0], [1], [0, 0, 1, 1], [], []>} : vector<8x128xf32>, vector<128x128xf32>, vector<8x128xf32> -> vector<8x128xf32>
    %18 = vector.broadcast %15 : vector<1x128xf32> to vector<8x128xf32>
    %19 = arith.addf %18, %17 : vector<8x128xf32>
    %c0_17 = arith.constant 0 : index
    %c0_18 = arith.constant 0 : index
    %20 = vector.load %arg8[%c0_17, %c0_18] : memref<8x128xf32, #tpu.memory_space<vmem>>, vector<8x128xf32>
    tpu.vector_store %arg8[%c0_17, %c0_18], %19 {strides = array<i32>} : memref<8x128xf32, #tpu.memory_space<vmem>>, vector<8x128xf32>,
    return
  }
  func.func @transform_0(%arg0: i32) -> (i32, i32) {
    %c0_i32 = arith.constant 0 : i32
    %c0_i32_0 = arith.constant 0 : i32
    return %arg0, %c0_i32 : i32, i32
  }
  func.func @transform_1(%arg0: i32) -> (i32, i32) {
    %c0_i32 = arith.constant 0 : i32
    %c0_i32_0 = arith.constant 0 : i32
    %c0_i32_1 = arith.constant 0 : i32
    return %c0_i32, %c0_i32_0 : i32, i32
  }
  func.func @transform_2(%arg0: i32) -> (i32, i32) {
    %c0_i32 = arith.constant 0 : i32
    %c0_i32_0 = arith.constant 0 : i32
    %c0_i32_1 = arith.constant 0 : i32
    return %c0_i32, %c0_i32_0 : i32, i32
  }
  func.func @transform_3(%arg0: i32) -> (i32, i32) {
    %c0_i32 = arith.constant 0 : i32
    %c0_i32_0 = arith.constant 0 : i32
    %c0_i32_1 = arith.constant 0 : i32
    return %c0_i32, %c0_i32_0 : i32, i32
  }
  func.func @transform_4(%arg0: i32) -> (i32, i32) {
    %c0_i32 = arith.constant 0 : i32
    %c0_i32_0 = arith.constant 0 : i32
    %c0_i32_1 = arith.constant 0 : i32
    return %c0_i32, %c0_i32_0 : i32, i32
  }
  func.func @transform_5(%arg0: i32) -> (i32, i32) {
    %c0_i32 = arith.constant 0 : i32
    %c0_i32_0 = arith.constant 0 : i32
    %c0_i32_1 = arith.constant 0 : i32
    return %c0_i32, %c0_i32_0 : i32, i32
  }
  func.func @transform_6(%arg0: i32) -> (i32, i32) {
    %c0_i32 = arith.constant 0 : i32
    %c0_i32_0 = arith.constant 0 : i32
    %c0_i32_1 = arith.constant 0 : i32
    return %c0_i32, %c0_i32_0 : i32, i32
  }
  func.func @transform_7(%arg0: i32) -> (i32, i32) {
    %c0_i32 = arith.constant 0 : i32
    %c0_i32_0 = arith.constant 0 : i32
    return %arg0, %c0_i32 : i32, i32
  }
}

</mosaic_0001>

<bundles_post_ra>
// kernel: tpu_custom_call.1
= control target key start
LH: loop header
LB: loop body
LE: loop exit
PB: predicated region body
PF: predicated region fallthrough
CT: control target
= control target key end

     0   :  { %12 = vsyncpa [#allocation3], 0  ;;  %s1538_s0 = inlined_call_operand.hbm [shape: f32[2,1024], index: 0, kind: input, shape index: {}]   ;;  %s1539_s1 = inlined_call_operand.hbm [shape: f32[1024,128], index: 1, kind: input, shape index: {}]   ;;  %s1540_s2 = inlined_call_operand.vmem [shape: f32[1,128], index: 2, kind: input, shape index: {}]   ;;  %s1541_s3 = inlined_call_operand.hbm [shape: f32[128,128], index: 3, kind: input, shape index: {}]   ;;  %s1542_s4 = inlined_call_operand.vmem [shape: f32[1,128], index: 4, kind: input, shape index: {}]   ;;  %s1543_s5 = inlined_call_operand.hbm [shape: f32[128,128], index: 5, kind: input, shape index: {}]   ;;  %s1544_s6 = inlined_call_operand.vmem [shape: f32[1,128], index: 6, kind: input, shape index: {}]   ;;  %s1545_s7 = inlined_call_operand.hbm [shape: f32[2,128], index: 7, kind: output, shape index: {}]  }
   0x1   :  { %13 = vsyncpa [#allocation6], 0 }
   0x2   :  { %14 = vsyncpa [#allocation9], 0 }
   0x3   :  { %15 = vsyncpa [#allocation4], 0 }
   0x4   :  { %20 = vsyncadd [#allocation3], 768  ;;  %s1372_s24 = smov [#allocation5]   ;;  %s1254_s28 = scalar_lea.hbm %s1539_s1, 16384 }
   0x5   :  { %s33_s25 = sshll.u32 %s1372_s24, 4  ;;  %p1255_p0 = scmp.ne.s32.totalorder %s1539_s1, %s1254_s28  ;;  %s34_s25 = int_to_ptr.vmem [resolvable:$true] %s33_s25 }
   0x6   :  { %p1258_p1 = scmp.lt.u32.totalorder %s1254_s28, %s1539_s1 }
   0x8   :  { %p1260_p2 = pnand %p1258_p1, %p1255_p0 }
   0xa   :  { %1263 = shalt.err (!%p1260_p2)
}
   0xb   :  { %s1264_s10 = scalar_lea.vmem %s34_s25, 16384  ;;  %p1269_p4 = scmp.lt.s32.totalorder %s34_s25, %s34_s25 }
   0xc   :  { %p1265_p3 = scmp.ne.s32.totalorder %s34_s25, %s1264_s10  ;;  %p1270_p5 = scmp.lt.s32.totalorder %s1264_s10, %s1264_s10 }
   0xe   :  { %p1271_p6 = por %p1270_p5, %p1269_p4 }
  0x10   :  { %p1272_p7 = pnand %p1271_p6, %p1265_p3 }
  0x12   :  { %1275 = shalt.err (!%p1272_p7)
}
  0x13   :  { %s1373_s11 = smov 128   ;;  %s1374_s12 = smov 8  }
  0x14   :  { %39 = dma.hbm_to_vmem [thread:$0]  %s1539_s1, 16384, %s34_s25, [#allocation6], %s1373_s11, %s1373_s11, %s1374_s12  }
  0x15   :  { %s1375_s15 = smov [#allocation2]   ;;  %s1276_s19 = scalar_lea.hbm %s1538_s0, 256 }
  0x16   :  { %s21_s16 = sshll.u32 %s1375_s15, 4  ;;  %p1277_p8 = scmp.ne.s32.totalorder %s1538_s0, %s1276_s19  ;;  %s22_s16 = int_to_ptr.vmem [resolvable:$true] %s21_s16 }
  0x17   :  { %p1280_p9 = scmp.lt.u32.totalorder %s1276_s19, %s1538_s0 }
  0x19   :  { %p1282_p10 = pnand %p1280_p9, %p1277_p8 }
  0x1b   :  { %1285 = shalt.err (!%p1282_p10)
}
  0x1c   :  { %s1286_s24 = scalar_lea.vmem %s22_s16, 256  ;;  %s1290_s1 = scalar_lea.vmem %s22_s16, 1024 }
  0x1d   :  { %p1287_p11 = scmp.ne.s32.totalorder %s22_s16, %s1286_s24  ;;  %p1291_p12 = scmp.lt.s32.totalorder %s22_s16, %s22_s16 }
  0x1e   :  { %p1292_p13 = scmp.lt.s32.totalorder %s1290_s1, %s1286_s24 }
  0x20   :  { %p1293_p0 = por %p1292_p13, %p1291_p12 }
  0x22   :  { %p1294_p1 = pnand %p1293_p0, %p1287_p11 }
  0x24   :  { %1297 = shalt.err (!%p1294_p1)
}
  0x25   :  { %s1376_s25 = smov 256   ;;  %s1377_s26 = smov 16  }
  0x26   :  { %27 = dma.hbm_to_vmem [thread:$0]  %s1538_s0, 256, %s22_s16, [#allocation3], %s1376_s25, %s1376_s25, %s1377_s26  }
  0x27   :  { %s1378_s29 = smov [#allocation7]   ;;  %s1379_s8 = smov [#allocation8]  }
  0x28   :  { %s47_s30 = sshll.u32 %s1378_s29, 4  ;;  %s61_s9 = sshll.u32 %s1379_s8, 4  ;;  %s48_s30 = int_to_ptr.vmem [resolvable:$true] %s47_s30  ;;  %s1454_s9 = int_to_ptr.vmem [resolvable:$true] %s61_s9 }
  0x29   :  { %s1298_s14 = scalar_lea.hbm %s1541_s3, 2048 }
  0x2a   :  { %p1299_p2 = scmp.ne.s32.totalorder %s1541_s3, %s1298_s14  ;;  %p1302_p3 = scmp.lt.u32.totalorder %s1298_s14, %s1541_s3 }
  0x2c   :  { %p1304_p4 = pnand %p1302_p3, %p1299_p2 }
  0x2e   :  { %1307 = shalt.err (!%p1304_p4)
}
  0x2f   :  { %s1308_s0 = scalar_lea.vmem %s48_s30, 2048  ;;  %p1313_p6 = scmp.lt.s32.totalorder %s48_s30, %s48_s30 }
  0x30   :  { %p1309_p5 = scmp.ne.s32.totalorder %s48_s30, %s1308_s0  ;;  %p1314_p7 = scmp.lt.s32.totalorder %s1308_s0, %s1308_s0 }
  0x32   :  { %p1315_p8 = por %p1314_p7, %p1313_p6 }
  0x34   :  { %p1316_p9 = pnand %p1315_p8, %p1309_p5 }
  0x36   :  { %1319 = shalt.err (!%p1316_p9)
}
  0x37   :  { %53 = dma.hbm_to_vmem [thread:$0]  %s1541_s3, 2048, %s48_s30, [#allocation6], %s1373_s11, %s1373_s11, %s1374_s12  }
  0x38   :  { %s1320_s23 = scalar_lea.hbm %s1543_s5, 2048 }
  0x39   :  { %p1321_p10 = scmp.ne.s32.totalorder %s1543_s5, %s1320_s23  ;;  %p1324_p11 = scmp.lt.u32.totalorder %s1320_s23, %s1543_s5 }
  0x3b   :  { %p1326_p12 = pnand %p1324_p11, %p1321_p10 }
  0x3d   :  { %1329 = shalt.err (!%p1326_p12)
}
  0x3e   :  { %s1330_s27 = scalar_lea.vmem %s1454_s9, 2048  ;;  %p1335_p0 = scmp.lt.s32.totalorder %s1454_s9, %s1454_s9 }
  0x3f   :  { %p1331_p13 = scmp.ne.s32.totalorder %s1454_s9, %s1330_s27  ;;  %p1336_p1 = scmp.lt.s32.totalorder %s1330_s27, %s1330_s27 }
  0x41   :  { %p1337_p2 = por %p1336_p1, %p1335_p0 }
  0x43   :  { %p1338_p3 = pnand %p1337_p2, %p1331_p13 }
  0x45   :  { %1341 = shalt.err (!%p1338_p3)
}
  0x46   :  { %67 = dma.hbm_to_vmem [thread:$0]  %s1543_s5, 2048, %s1454_s9, [#allocation9], %s1373_s11, %s1373_s11, %s1374_s12  }
  0x47   :  { %1364 = dma.done.wait [#allocation3], 1024  }
  0x48   :  { %1365 = vsyncadd [#allocation3], 4294966272 }
  0x49   :  { %1366 = dma.done.wait [#allocation6], 18432  }
  0x4a   :  { %1367 = vsyncadd [#allocation6], 4294948864 }
  0x4b   :  { %1368 = dma.done.wait [#allocation9], 2048  }
  0x4c   :  { %1369 = vsyncadd [#allocation9], 4294965248  ;;  %v107_v0 = vld [vmem:[#allocation5 + $0x80] sm:$0xff]  ;;  %v108_v1 = vld [vmem:[#allocation5 + $0x88] sm:$0xff]  ;;  %v1380_v51 = vmov 1983009808   ;;  %v234_v53 = vlaneseq }
  0x4d   :  { %v139_v2 = vld [vmem:[#allocation5 + $0x180] sm:$0xff]  ;;  %v1051_v3 = vpack.c.bf16 %v108_v1, %v107_v0  ;;  %v140_v4 = vld [vmem:[#allocation5 + $0x188] sm:$0xff]  ;;  %v109_v11 = vld [vmem:[#allocation5 + $0x90] sm:$0xff]  ;;  %v232_v52 = vunpack.c.l.s4 %v1380_v51  ;;  %vm1382_vm0 = vmmov 0  }
  0x4e   :  { %v91_v5 = vld [vmem:[#allocation5] sm:$0xff]  ;;  %v92_v6 = vld [vmem:[#allocation5 + $0x8] sm:$0xff]  ;;  %v1083_v7 = vpack.c.bf16 %v140_v4, %v139_v2  ;;  %v110_v13 = vld [vmem:[#allocation5 + $0x98] sm:$0xff] }
  0x4f   :  { %v1053_v8 = vpack.c.bf16 %v92_v6, %v91_v5  ;;  %v123_v9 = vld [vmem:[#allocation5 + $0x100] sm:$0xff]  ;;  %v124_v10 = vld [vmem:[#allocation5 + $0x108] sm:$0xff]  ;;  %1052 = vmatprep.subr.bf16.mxu0 %v1051_v3  ;;  %v141_v14 = vld [vmem:[#allocation5 + $0x190] sm:$0xff]  ;;  %v1055_v16 = vpack.c.bf16 %v110_v13, %v109_v11  ;;  %v233_v4 = vunpack.c.0.s8 %v232_v52  ;;  %v235_v5 = vshrl.u32 %v234_v53, 7 }
  0x50   :  { %v1085_v12 = vpack.c.bf16 %v124_v10, %v123_v9  ;;  %v142_v15 = vld [vmem:[#allocation5 + $0x198] sm:$0xff]  ;;  %1084 = vmatprep.subr.bf16.mxu1 %v1083_v7  ;;  %v93_v18 = vld [vmem:[#allocation5 + $0x10] sm:$0xff]  ;;  %v111_v23 = vld [vmem:[#allocation5 + $0xa0] sm:$0xff] }
  0x51   :  { %1054 = vmatpush3.bf16.msra.mxu0 %v1053_v8  ;;  %v1087_v17 = vpack.c.bf16 %v142_v15, %v141_v14  ;;  %v94_v19 = vld [vmem:[#allocation5 + $0x18] sm:$0xff]  ;;  %v125_v20 = vld [vmem:[#allocation5 + $0x110] sm:$0xff]  ;;  %v112_v24 = vld [vmem:[#allocation5 + $0xa8] sm:$0xff] }
  0x52   :  { %1086 = vmatpush3.bf16.msra.mxu1 %v1085_v12  ;;  %v1057_v21 = vpack.c.bf16 %v94_v19, %v93_v18  ;;  %v126_v22 = vld [vmem:[#allocation5 + $0x118] sm:$0xff]  ;;  %1056 = vmatprep.subr.bf16.mxu0 %v1055_v16  ;;  %v1059_v26 = vpack.c.bf16 %v112_v24, %v111_v23  ;;  %v143_v27 = vld [vmem:[#allocation5 + $0x1a0] sm:$0xff]  ;;  %v144_v28 = vld [vmem:[#allocation5 + $0x1a8] sm:$0xff] }
  0x53   :  { %1088 = vmatprep.subr.bf16.mxu1 %v1087_v17  ;;  %v1089_v25 = vpack.c.bf16 %v126_v22, %v125_v20  ;;  %v95_v29 = vld [vmem:[#allocation5 + $0x20] sm:$0xff]  ;;  %v1091_v30 = vpack.c.bf16 %v144_v28, %v143_v27  ;;  %v96_v31 = vld [vmem:[#allocation5 + $0x28] sm:$0xff]  ;;  %v113_v35 = vld [vmem:[#allocation5 + $0xb0] sm:$0xff]  ;;  %v1491_v22 = vsub.s32 %v233_v4, %v235_v5 }
  0x54   :  { %v127_v32 = vld [vmem:[#allocation5 + $0x120] sm:$0xff]  ;;  %v128_v33 = vld [vmem:[#allocation5 + $0x128] sm:$0xff]  ;;  %v1061_v34 = vpack.c.bf16 %v96_v31, %v95_v29  ;;  %v114_v36 = vld [vmem:[#allocation5 + $0xb8] sm:$0xff] }
  0x55   :  { %1058 = vmatpush3.bf16.msra.mxu0 %v1057_v21  ;;  %v145_v37 = vld [vmem:[#allocation5 + $0x1b0] sm:$0xff]  ;;  %v1093_v38 = vpack.c.bf16 %v128_v33, %v127_v32  ;;  %v1063_v39 = vpack.c.bf16 %v114_v36, %v113_v35  ;;  %v146_v40 = vld [vmem:[#allocation5 + $0x1b8] sm:$0xff]  ;;  %v115_v46 = vld [vmem:[#allocation5 + $0xc0] sm:$0xff] }
  0x56   :  { %1090 = vmatpush3.bf16.msra.mxu1 %v1089_v25  ;;  %1060 = vmatprep.subr.bf16.mxu0 %v1059_v26  ;;  %v97_v41 = vld [vmem:[#allocation5 + $0x30] sm:$0xff]  ;;  %v98_v42 = vld [vmem:[#allocation5 + $0x38] sm:$0xff]  ;;  %v1095_v43 = vpack.c.bf16 %v146_v40, %v145_v37  ;;  %v116_v47 = vld [vmem:[#allocation5 + $0xc8] sm:$0xff] }
  0x57   :  { %1092 = vmatprep.subr.bf16.mxu1 %v1091_v30  ;;  %v129_v44 = vld [vmem:[#allocation5 + $0x130] sm:$0xff]  ;;  %v130_v45 = vld [vmem:[#allocation5 + $0x138] sm:$0xff]  ;;  %v147_v48 = vld [vmem:[#allocation5 + $0x1c0] sm:$0xff]  ;;  %v1065_v50 = vpack.c.bf16 %v98_v42, %v97_v41  ;;  %v1067_v55 = vpack.c.bf16 %v116_v47, %v115_v46 }
  0x58   :  { %v148_v49 = vld [vmem:[#allocation5 + $0x1c8] sm:$0xff]  ;;  %v1097_v54 = vpack.c.bf16 %v130_v45, %v129_v44  ;;  %v99_v56 = vld [vmem:[#allocation5 + $0x40] sm:$0xff]  ;;  %v117_v61 = vld [vmem:[#allocation5 + $0xd0] sm:$0xff] }
  0x59   :  { %1062 = vmatpush3.bf16.msra.mxu0 %v1061_v34  ;;  %v100_v57 = vld [vmem:[#allocation5 + $0x48] sm:$0xff]  ;;  %v131_v58 = vld [vmem:[#allocation5 + $0x140] sm:$0xff]  ;;  %v1099_v59 = vpack.c.bf16 %v148_v49, %v147_v48  ;;  %v118_v62 = vld [vmem:[#allocation5 + $0xd8] sm:$0xff] }
  0x5a   :  { %1094 = vmatpush3.bf16.msra.mxu1 %v1093_v38  ;;  %1064 = vmatprep.subr.bf16.mxu0 %v1063_v39  ;;  %v132_v60 = vld [vmem:[#allocation5 + $0x148] sm:$0xff]  ;;  %v149_v63 = vld [vmem:[#allocation5 + $0x1d0] sm:$0xff]  ;;  %v150_v0 = vld [vmem:[#allocation5 + $0x1d8] sm:$0xff]  ;;  %v1069_v1 = vpack.c.bf16 %v100_v57, %v99_v56  ;;  %v1071_v7 = vpack.c.bf16 %v118_v62, %v117_v61 }
  0x5b   :  { %1096 = vmatprep.subr.bf16.mxu1 %v1095_v43  ;;  %v101_v2 = vld [vmem:[#allocation5 + $0x50] sm:$0xff]  ;;  %v102_v3 = vld [vmem:[#allocation5 + $0x58] sm:$0xff]  ;;  %v1101_v6 = vpack.c.bf16 %v132_v60, %v131_v58  ;;  %v119_v10 = vld [vmem:[#allocation5 + $0xe0] sm:$0xff]  ;;  %v1103_v11 = vpack.c.bf16 %v150_v0, %v149_v63 }
  0x5c   :  { %v133_v8 = vld [vmem:[#allocation5 + $0x150] sm:$0xff]  ;;  %v134_v9 = vld [vmem:[#allocation5 + $0x158] sm:$0xff]  ;;  %v120_v12 = vld [vmem:[#allocation5 + $0xe8] sm:$0xff]  ;;  %v1073_v18 = vpack.c.bf16 %v102_v3, %v101_v2 }
  0x5d   :  { %1066 = vmatpush3.bf16.msra.mxu0 %v1065_v50  ;;  %v151_v13 = vld [vmem:[#allocation5 + $0x1e0] sm:$0xff]  ;;  %v152_v14 = vld [vmem:[#allocation5 + $0x1e8] sm:$0xff]  ;;  %v121_v20 = vld [vmem:[#allocation5 + $0xf0] sm:$0xff]  ;;  %v1105_v23 = vpack.c.bf16 %v134_v9, %v133_v8  ;;  %v1075_v24 = vpack.c.bf16 %v120_v12, %v119_v10 }
  0x5e   :  { %1098 = vmatpush3.bf16.msra.mxu1 %v1097_v54  ;;  %1068 = vmatprep.subr.bf16.mxu0 %v1067_v55  ;;  %v103_v15 = vld [vmem:[#allocation5 + $0x60] sm:$0xff]  ;;  %v104_v16 = vld [vmem:[#allocation5 + $0x68] sm:$0xff]  ;;  %v122_v21 = vld [vmem:[#allocation5 + $0xf8] sm:$0xff]  ;;  %v1107_v27 = vpack.c.bf16 %v152_v14, %v151_v13 }
  0x5f   :  { %1100 = vmatprep.subr.bf16.mxu1 %v1099_v59  ;;  %v135_v17 = vld [vmem:[#allocation5 + $0x160] sm:$0xff]  ;;  %v136_v19 = vld [vmem:[#allocation5 + $0x168] sm:$0xff]  ;;  %v153_v25 = vld [vmem:[#allocation5 + $0x1f0] sm:$0xff]  ;;  %v1077_v32 = vpack.c.bf16 %v104_v16, %v103_v15  ;;  %v1079_v34 = vpack.c.bf16 %v122_v21, %v121_v20 }
  0x60   :  { %v154_v26 = vld [vmem:[#allocation5 + $0x1f8] sm:$0xff]  ;;  %v1242_v28 = vld [vmem:[#allocation2] ss:$16 sps:$4 sm:$0xff]   ;;  %v1246_v30 = vld [vmem:[#allocation2 + $0x4] ss:$16 sps:$4 sm:$0xff]   ;;  %v1109_v33 = vpack.c.bf16 %v136_v19, %v135_v17 }
  0x61   :  { %1070 = vmatpush3.bf16.msra.mxu0 %v1069_v1  ;;  %v1244_v29 = vld [vmem:[#allocation2 + $0x20] ss:$16 sps:$4 sm:$0xff]   ;;  %v1247_v31 = vld [vmem:[#allocation2 + $0x24] ss:$16 sps:$4 sm:$0xff]   ;;  %v237_v35 = vrot.slane %v1242_v28, %v1491_v22  ;;  %v106_v37 = vld [vmem:[#allocation5 + $0x78] sm:$0xff]  ;;  %v244_v40 = vrot.slane %v1246_v30, %v1491_v22  ;;  %v1111_v42 = vpack.c.bf16 %v154_v26, %v153_v25 }
  0x62   :  { %1102 = vmatpush3.bf16.msra.mxu1 %v1101_v6  ;;  %1072 = vmatprep.subr.bf16.mxu0 %v1071_v7  ;;  %v105_v36 = vld [vmem:[#allocation5 + $0x70] sm:$0xff]  ;;  %v251_v39 = vrot.slane %v1244_v29, %v1491_v22  ;;  %v258_v41 = vrot.slane %v1247_v31, %v1491_v22  ;;  %v138_v43 = vld [vmem:[#allocation5 + $0x178] sm:$0xff]  ;;  %v171_v44 = vld [vmem:[#allocation5 + $0x280] sm:$0xff] }
  0x63   :  { %1104 = vmatprep.subr.bf16.mxu1 %v1103_v11  ;;  %v137_v38 = vld [vmem:[#allocation5 + $0x170] sm:$0xff]  ;;  %v172_v45 = vld [vmem:[#allocation5 + $0x288] sm:$0xff]  ;;  %v203_v48 = vld [vmem:[#allocation5 + $0x380] sm:$0xff]  ;;  %v1081_v50 = vpack.c.bf16 %v106_v37, %v105_v36 }
  0x64   :  { %v260_v46 = vcombine.high %v237_v35, %v251_v39  ;;  %v262_v47 = vcombine.high %v244_v40, %v258_v41  ;;  %v204_v49 = vld [vmem:[#allocation5 + $0x388] sm:$0xff]  ;;  %v1113_v51 = vpack.c.bf16 %v138_v43, %v137_v38  ;;  %v1115_v52 = vpack.c.bf16 %v172_v45, %v171_v44  ;;  %v155_v53 = vld [vmem:[#allocation5 + $0x200] sm:$0xff]  ;;  %v173_v58 = vld [vmem:[#allocation5 + $0x290] sm:$0xff] }
  0x65   :  { %1074 = vmatpush3.bf16.msra.mxu0 %v1073_v18  ;;  %v156_v54 = vld [vmem:[#allocation5 + $0x208] sm:$0xff]  ;;  %v187_v55 = vld [vmem:[#allocation5 + $0x300] sm:$0xff]  ;;  %v1147_v56 = vpack.c.bf16 %v204_v49, %v203_v48  ;;  %v174_v59 = vld [vmem:[#allocation5 + $0x298] sm:$0xff]  ;;  %v259_v60 = vcombine.low %v237_v35, %v251_v39  ;;  %v261_v63 = vcombine.low %v244_v40, %v258_v41 }
  0x66   :  { %1106 = vmatpush3.bf16.msra.mxu1 %v1105_v23  ;;  %1076 = vmatprep.subr.bf16.mxu0 %v1075_v24  ;;  %v188_v57 = vld [vmem:[#allocation5 + $0x308] sm:$0xff]  ;;  %v205_v61 = vld [vmem:[#allocation5 + $0x390] sm:$0xff]  ;;  %v206_v62 = vld [vmem:[#allocation5 + $0x398] sm:$0xff]  ;;  %v1117_v0 = vpack.c.bf16 %v156_v54, %v155_v53  ;;  %v1119_v2 = vpack.c.bf16 %v174_v59, %v173_v58 }
  0x67   :  { %1108 = vmatprep.subr.bf16.mxu1 %v1107_v27  ;;  %371 = vmatprep.mubr.f32.mxu0 %v260_v46  ;;  %v1149_v1 = vpack.c.bf16 %v188_v57, %v187_v55  ;;  %v157_v3 = vld [vmem:[#allocation5 + $0x210] sm:$0xff]  ;;  %v158_v4 = vld [vmem:[#allocation5 + $0x218] sm:$0xff]  ;;  %v1151_v6 = vpack.c.bf16 %v206_v62, %v205_v61  ;;  %v175_v8 = vld [vmem:[#allocation5 + $0x2a0] sm:$0xff] }
  0x68   :  { %441 = vmatprep.mubr.f32.mxu1 %v262_v47  ;;  %v189_v5 = vld [vmem:[#allocation5 + $0x310] sm:$0xff]  ;;  %v190_v7 = vld [vmem:[#allocation5 + $0x318] sm:$0xff]  ;;  %v176_v9 = vld [vmem:[#allocation5 + $0x2a8] sm:$0xff]  ;;  %v1121_v12 = vpack.c.bf16 %v158_v4, %v157_v3 }
  0x69   :  { %1078 = vmatpush3.bf16.msra.mxu0 %v1077_v32  ;;  %v207_v10 = vld [vmem:[#allocation5 + $0x3a0] sm:$0xff]  ;;  %v208_v11 = vld [vmem:[#allocation5 + $0x3a8] sm:$0xff]  ;;  %v1153_v13 = vpack.c.bf16 %v190_v7, %v189_v5  ;;  %v1123_v14 = vpack.c.bf16 %v176_v9, %v175_v8  ;;  %v177_v20 = vld [vmem:[#allocation5 + $0x2b0] sm:$0xff] }
  0x6a   :  { %1110 = vmatpush3.bf16.msra.mxu1 %v1109_v33  ;;  %1080 = vmatprep.subr.bf16.mxu0 %v1079_v34  ;;  %v159_v15 = vld [vmem:[#allocation5 + $0x220] sm:$0xff]  ;;  %v160_v16 = vld [vmem:[#allocation5 + $0x228] sm:$0xff]  ;;  %v1155_v18 = vpack.c.bf16 %v208_v11, %v207_v10  ;;  %v178_v21 = vld [vmem:[#allocation5 + $0x2b8] sm:$0xff] }
  0x6b   :  { %1112 = vmatprep.subr.bf16.mxu1 %v1111_v42  ;;  %v191_v17 = vld [vmem:[#allocation5 + $0x320] sm:$0xff]  ;;  %v192_v19 = vld [vmem:[#allocation5 + $0x328] sm:$0xff]  ;;  %v209_v23 = vld [vmem:[#allocation5 + $0x3b0] sm:$0xff]  ;;  %v1125_v25 = vpack.c.bf16 %v160_v16, %v159_v15  ;;  %v1127_v27 = vpack.c.bf16 %v178_v21, %v177_v20 }
  0x6c   :  { %v210_v24 = vld [vmem:[#allocation5 + $0x3b8] sm:$0xff]  ;;  %v1157_v26 = vpack.c.bf16 %v192_v19, %v191_v17  ;;  %v161_v28 = vld [vmem:[#allocation5 + $0x230] sm:$0xff]  ;;  %v179_v33 = vld [vmem:[#allocation5 + $0x2c0] sm:$0xff] }
  0x6d   :  { %1082 = vmatpush3.bf16.msra.mxu0 %v1081_v50  ;;  %v162_v29 = vld [vmem:[#allocation5 + $0x238] sm:$0xff]  ;;  %v193_v30 = vld [vmem:[#allocation5 + $0x330] sm:$0xff]  ;;  %v1159_v31 = vpack.c.bf16 %v210_v24, %v209_v23  ;;  %v180_v34 = vld [vmem:[#allocation5 + $0x2c8] sm:$0xff] }
  0x6e   :  { %1114 = vmatpush3.bf16.msra.mxu1 %v1113_v51  ;;  %1116 = vmatprep.subr.bf16.mxu0 %v1115_v52  ;;  %v194_v32 = vld [vmem:[#allocation5 + $0x338] sm:$0xff]  ;;  %v163_v35 = vld [vmem:[#allocation5 + $0x240] sm:$0xff]  ;;  %v164_v36 = vld [vmem:[#allocation5 + $0x248] sm:$0xff]  ;;  %v1129_v40 = vpack.c.bf16 %v162_v29, %v161_v28  ;;  %v1131_v45 = vpack.c.bf16 %v180_v34, %v179_v33  ;;  %v1381_v34 = vmov 0.0|0.0  }
  0x6f   :  { %1148 = vmatprep.subr.bf16.mxu1 %v1147_v56  ;;  %v211_v37 = vld [vmem:[#allocation5 + $0x3c0] sm:$0xff]  ;;  %v212_v38 = vld [vmem:[#allocation5 + $0x3c8] sm:$0xff]  ;;  %v181_v42 = vld [vmem:[#allocation5 + $0x2d0] sm:$0xff]  ;;  %v1161_v44 = vpack.c.bf16 %v194_v32, %v193_v30  ;;  %v1133_v53 = vpack.c.bf16 %v164_v36, %v163_v35 }
  0x70   :  { %372 = vmatmul.mubr.f32.vlgmr.msra.gmra.mrb[0].mxu0 %v259_v60  ;;  %v195_v39 = vld [vmem:[#allocation5 + $0x340] sm:$0xff]  ;;  %v196_v41 = vld [vmem:[#allocation5 + $0x348] sm:$0xff]  ;;  %v182_v43 = vld [vmem:[#allocation5 + $0x2d8] sm:$0xff]  ;;  %v1163_v48 = vpack.c.bf16 %v212_v38, %v211_v37 }
  0x71   :  { %442 = vmatmul.mubr.f32.vlgmr.msra.gmra.mrb[0].mxu1 %v261_v63  ;;  %1118 = vmatpush3.bf16.msra.mxu0 %v1117_v0  ;;  %v213_v46 = vld [vmem:[#allocation5 + $0x3d0] sm:$0xff]  ;;  %v214_v47 = vld [vmem:[#allocation5 + $0x3d8] sm:$0xff]  ;;  %v1165_v54 = vpack.c.bf16 %v196_v41, %v195_v39  ;;  %v1135_v55 = vpack.c.bf16 %v182_v43, %v181_v42  ;;  %v215_v3 = vld [vmem:[#allocation5 + $0x3e0] sm:$0xff] }
  0x72   :  { %1150 = vmatpush3.bf16.msra.mxu1 %v1149_v1  ;;  %1120 = vmatprep.subr.bf16.mxu0 %v1119_v2  ;;  %v1248_v49 = vld [vmem:[#allocation2 + $0x8] ss:$16 sps:$4 sm:$0xff]   ;;  %v1252_v51 = vld [vmem:[#allocation2 + $0xc] ss:$16 sps:$4 sm:$0xff]   ;;  %v165_v57 = vld [vmem:[#allocation5 + $0x250] sm:$0xff]  ;;  %v1167_v63 = vpack.c.bf16 %v214_v47, %v213_v46 }
  0x73   :  { %1152 = vmatprep.subr.bf16.mxu1 %v1151_v6  ;;  %v1250_v50 = vld [vmem:[#allocation2 + $0x28] ss:$16 sps:$4 sm:$0xff]   ;;  %v1253_v52 = vld [vmem:[#allocation2 + $0x2c] ss:$16 sps:$4 sm:$0xff]   ;;  %v273_v56 = vrot.slane %v1248_v49, %v1491_v22  ;;  %v197_v59 = vld [vmem:[#allocation5 + $0x350] sm:$0xff]  ;;  %v280_v61 = vrot.slane %v1252_v51, %v1491_v22 }
  0x74   :  { %v166_v58 = vld [vmem:[#allocation5 + $0x258] sm:$0xff]  ;;  %v287_v60 = vrot.slane %v1250_v50, %v1491_v22  ;;  %v294_v62 = vrot.slane %v1253_v52, %v1491_v22  ;;  %v183_v1 = vld [vmem:[#allocation5 + $0x2e0] sm:$0xff]  ;;  %v184_v2 = vld [vmem:[#allocation5 + $0x2e8] sm:$0xff] }
  0x75   :  { %1122 = vmatpush3.bf16.msra.mxu0 %v1121_v12  ;;  %v198_v0 = vld [vmem:[#allocation5 + $0x358] sm:$0xff]  ;;  %v216_v4 = vld [vmem:[#allocation5 + $0x3e8] sm:$0xff]  ;;  %v1137_v7 = vpack.c.bf16 %v166_v58, %v165_v57  ;;  %v1139_v9 = vpack.c.bf16 %v184_v2, %v183_v1  ;;  %v167_v10 = vld [vmem:[#allocation5 + $0x260] sm:$0xff] }
  0x76   :  { %1154 = vmatpush3.bf16.msra.mxu1 %v1153_v13  ;;  %1124 = vmatprep.subr.bf16.mxu0 %v1123_v14  ;;  %v296_v5 = vcombine.high %v273_v56, %v287_v60  ;;  %v298_v6 = vcombine.high %v280_v61, %v294_v62  ;;  %v1169_v8 = vpack.c.bf16 %v198_v0, %v197_v59  ;;  %v168_v11 = vld [vmem:[#allocation5 + $0x268] sm:$0xff]  ;;  %v199_v12 = vld [vmem:[#allocation5 + $0x360] sm:$0xff]  ;;  %v185_v14 = vld [vmem:[#allocation5 + $0x2f0] sm:$0xff] }
  0x77   :  { %1156 = vmatprep.subr.bf16.mxu1 %v1155_v18  ;;  %v1171_v22 = vpack.c.bf16 %v216_v4, %v215_v3  ;;  %v200_v13 = vld [vmem:[#allocation5 + $0x368] sm:$0xff]  ;;  %v186_v15 = vld [vmem:[#allocation5 + $0x2f8] sm:$0xff]  ;;  %v217_v16 = vld [vmem:[#allocation5 + $0x3f0] sm:$0xff]  ;;  %v1141_v18 = vpack.c.bf16 %v168_v11, %v167_v10  ;;  %v295_v29 = vcombine.low %v273_v56, %v287_v60  ;;  %v297_v30 = vcombine.low %v280_v61, %v294_v62 }
  0x78   :  { %511 = vmatprep.mubr.f32.mxu0 %v296_v5  ;;  %v218_v17 = vld [vmem:[#allocation5 + $0x3f8] sm:$0xff]  ;;  %581 = vmatprep.mubr.f32.mxu1 %v298_v6  ;;  %v1173_v19 = vpack.c.bf16 %v200_v13, %v199_v12  ;;  %v1143_v20 = vpack.c.bf16 %v186_v15, %v185_v14  ;;  %v169_v21 = vld [vmem:[#allocation5 + $0x270] sm:$0xff]  ;;  %v597_v32 = vld [vmem:[#allocation7 + $0x8] sm:$0xff]  ;;  %v1383_v56 = vmov 0.0  }
  0x79   :  { %1126 = vmatpush3.bf16.msra.mxu0 %v1125_v25  ;;  %v170_v23 = vld [vmem:[#allocation5 + $0x278] sm:$0xff]  ;;  %v1175_v24 = vpack.c.bf16 %v218_v17, %v217_v16  ;;  %v201_v25 = vld [vmem:[#allocation5 + $0x370] sm:$0xff]  ;;  %v600_v38 = vld [vmem:[#allocation7 + $0x20] sm:$0xff] }
  0x7a   :  { %1158 = vmatpush3.bf16.msra.mxu1 %v1157_v26  ;;  %1128 = vmatprep.subr.bf16.mxu0 %v1127_v27  ;;  %v202_v26 = vld [vmem:[#allocation5 + $0x378] sm:$0xff]  ;;  %v1145_v27 = vpack.c.bf16 %v170_v23, %v169_v21  ;;  %v598_v33 = vld [vmem:[#allocation7 + $0x10] sm:$0xff]  ;;  %v601_v39 = vld [vmem:[#allocation7 + $0x28] sm:$0xff] }
  0x7b   :  { %1160 = vmatprep.subr.bf16.mxu1 %v1159_v31  ;;  %v1177_v28 = vpack.c.bf16 %v202_v26, %v201_v25  ;;  %v596_v31 = vld [vmem:[#allocation7] sm:$0xff]  ;;  %v599_v36 = vld [vmem:[#allocation7 + $0x18] sm:$0xff]  ;;  %v602_v41 = vld [vmem:[#allocation7 + $0x30] sm:$0xff] }
  0x7c   :  { %v1180_v35 = vpack.c.bf16 %v597_v32, %v596_v31  ;;  %v1183_v37 = vpack.c.bf16 %v599_v36, %v598_v33  ;;  %v603_v42 = vld [vmem:[#allocation7 + $0x38] sm:$0xff]  ;;  %v606_v47 = vld [vmem:[#allocation7 + $0x50] sm:$0xff]  ;;  %v608_v50 = vld [vmem:[#allocation7 + $0x60] sm:$0xff] }
  0x7d   :  { %1130 = vmatpush3.bf16.msra.mxu0 %v1129_v40  ;;  %v1186_v40 = vpack.c.bf16 %v601_v39, %v600_v38  ;;  %v1189_v43 = vpack.c.bf16 %v603_v42, %v602_v41  ;;  %v609_v51 = vld [vmem:[#allocation7 + $0x68] sm:$0xff]  ;;  %v691_v57 = vld [vmem:[#allocation8] sm:$0xff]  ;;  %v693_v59 = vld [vmem:[#allocation8 + $0x10] sm:$0xff] }
  0x7e   :  { %1162 = vmatpush3.bf16.msra.mxu1 %v1161_v44  ;;  %1132 = vmatprep.subr.bf16.mxu0 %v1131_v45  ;;  %v604_v44 = vld [vmem:[#allocation7 + $0x40] sm:$0xff]  ;;  %v605_v45 = vld [vmem:[#allocation7 + $0x48] sm:$0xff]  ;;  %v1198_v52 = vpack.c.bf16 %v609_v51, %v608_v50  ;;  %v694_v61 = vld [vmem:[#allocation8 + $0x18] sm:$0xff] }
  0x7f   :  { %1164 = vmatprep.subr.bf16.mxu1 %v1163_v48  ;;  %v1192_v46 = vpack.c.bf16 %v605_v45, %v604_v44  ;;  %v607_v48 = vld [vmem:[#allocation7 + $0x58] sm:$0xff]  ;;  %v692_v58 = vld [vmem:[#allocation8 + $0x8] sm:$0xff]  ;;  %v1207_v62 = vpack.c.bf16 %v694_v61, %v693_v59  ;;  %v697_v2 = vld [vmem:[#allocation8 + $0x30] sm:$0xff] }
  0x80   :  { %v1195_v49 = vpack.c.bf16 %v607_v48, %v606_v47  ;;  %v1204_v60 = vpack.c.bf16 %v692_v58, %v691_v57  ;;  %v696_v0 = vld [vmem:[#allocation8 + $0x28] sm:$0xff]  ;;  %v698_v3 = vld [vmem:[#allocation8 + $0x38] sm:$0xff]  ;;  %v699_v5 = vld [vmem:[#allocation8 + $0x40] sm:$0xff] }
  0x81   :  { %1134 = vmatpush3.bf16.msra.mxu0 %v1133_v53  ;;  %v610_v53 = vld [vmem:[#allocation7 + $0x70] sm:$0xff]  ;;  %v1213_v4 = vpack.c.bf16 %v698_v3, %v697_v2  ;;  %v700_v6 = vld [vmem:[#allocation8 + $0x48] sm:$0xff]  ;;  %v703_v11 = vld [vmem:[#allocation8 + $0x60] sm:$0xff] }
  0x82   :  { %1166 = vmatpush3.bf16.msra.mxu1 %v1165_v54  ;;  %1136 = vmatprep.subr.bf16.mxu0 %v1135_v55  ;;  %v611_v54 = vld [vmem:[#allocation7 + $0x78] sm:$0xff]  ;;  %v704_v12 = vld [vmem:[#allocation8 + $0x68] sm:$0xff]  ;;  %v705_v32 = vld [vmem:[#allocation8 + $0x70] sm:$0xff] }
  0x83   :  { %1168 = vmatprep.subr.bf16.mxu1 %v1167_v63  ;;  %v1201_v55 = vpack.c.bf16 %v611_v54, %v610_v53  ;;  %v695_v63 = vld [vmem:[#allocation8 + $0x20] sm:$0xff]  ;;  %v706_v33 = vld [vmem:[#allocation8 + $0x78] sm:$0xff] }
  0x84   :  { %v1210_v1 = vpack.c.bf16 %v696_v0, %v695_v63 }
  0x85   :  { %1138 = vmatpush3.bf16.msra.mxu0 %v1137_v7  ;;  %v1216_v7 = vpack.c.bf16 %v700_v6, %v699_v5 }
  0x86   :  { %1170 = vmatpush3.bf16.msra.mxu1 %v1169_v8  ;;  %1140 = vmatprep.subr.bf16.mxu0 %v1139_v9  ;;  %v701_v8 = vld [vmem:[#allocation8 + $0x50] sm:$0xff]  ;;  %v702_v9 = vld [vmem:[#allocation8 + $0x58] sm:$0xff] }
  0x87   :  { %1172 = vmatprep.subr.bf16.mxu1 %v1171_v22  ;;  %v1219_v10 = vpack.c.bf16 %v702_v9, %v701_v8  ;;  %v1222_v22 = vpack.c.bf16 %v704_v12, %v703_v11 }
  0x89   :  { %1142 = vmatpush3.bf16.msra.mxu0 %v1141_v18 }
  0x8a   :  { %1174 = vmatpush3.bf16.msra.mxu1 %v1173_v19  ;;  %1144 = vmatprep.subr.bf16.mxu0 %v1143_v20 }
  0x8b   :  { %1176 = vmatprep.subr.bf16.mxu1 %v1175_v24 }
  0x8d   :  { %1146 = vmatpush3.bf16.msra.mxu0 %v1145_v27 }
  0x8e   :  { %1178 = vmatpush3.bf16.msra.mxu1 %v1177_v28  ;;  %1179 = vmatprep.subr.bf16.mxu0 %v1381_v34  ;;  %v804_v28 = vld [vmem:[%s1540_s2] ss:$0 sm:$0xff] }
  0x8f   :  { %1203 = vmatprep.subr.bf16.mxu1 %v1381_v34 }
  0x90   :  { %512 = vmatmul.mubr.f32.vlgmr.msra.gmra.mrb[2].mxu0 %v295_v29 }
  0x91   :  { %582 = vmatmul.mubr.f32.vlgmr.msra.gmra.mrb[2].mxu1 %v297_v30  ;;  %1181 = vmatpush3.bf16.msra.mxu0 %v1180_v35  ;;  %v805_v35 = vld [vmem:[%s1542_s4] ss:$0 sm:$0xff] }
  0x92   :  { %1182 = vmatprep.subr.bf16.mxu0 %v1381_v34  ;;  %1013 = vmatprep.mubr.msk.f32.mxu0 %vm1382_vm0, %v1383_v56 }
  0x93   :  { %1048 = vmatprep.mubr.msk.f32.mxu1 %vm1382_vm0, %v1383_v56  ;;  %1205 = vmatpush3.bf16.msra.mxu1 %v1204_v60 }
  0x94   :  { %1206 = vmatprep.subr.bf16.mxu1 %v1381_v34 }
  0x95   :  { %1184 = vmatpush3.bf16.msra.mxu0 %v1183_v37 }
  0x96   :  { %1185 = vmatprep.subr.bf16.mxu0 %v1381_v34 }
  0x97   :  { %1208 = vmatpush3.bf16.msra.mxu1 %v1207_v62 }
  0x98   :  { %1209 = vmatprep.subr.bf16.mxu1 %v1381_v34 }
  0x99   :  { %1187 = vmatpush3.bf16.msra.mxu0 %v1186_v40  ;;  %v806_v40 = vld [vmem:[%s1544_s6] ss:$0 sm:$0xff] }
  0x9a   :  { %1188 = vmatprep.subr.bf16.mxu0 %v1381_v34 }
  0x9b   :  { %1211 = vmatpush3.bf16.msra.mxu1 %v1210_v1 }
  0x9c   :  { %1212 = vmatprep.subr.bf16.mxu1 %v1381_v34 }
  0x9d   :  { %1190 = vmatpush3.bf16.msra.mxu0 %v1189_v43 }
  0x9e   :  { %1191 = vmatprep.subr.bf16.mxu0 %v1381_v34 }
  0x9f   :  { %1214 = vmatpush3.bf16.msra.mxu1 %v1213_v4 }
  0xa0   :  { %1215 = vmatprep.subr.bf16.mxu1 %v1381_v34 }
  0xa1   :  { %1193 = vmatpush3.bf16.msra.mxu0 %v1192_v46 }
  0xa2   :  { %1194 = vmatprep.subr.bf16.mxu0 %v1381_v34 }
  0xa3   :  { %1217 = vmatpush3.bf16.msra.mxu1 %v1216_v7 }
  0xa4   :  { %1218 = vmatprep.subr.bf16.mxu1 %v1381_v34 }
  0xa5   :  { %1196 = vmatpush3.bf16.msra.mxu0 %v1195_v49 }
  0xa6   :  { %1197 = vmatprep.subr.bf16.mxu0 %v1381_v34 }
  0xa7   :  { %1220 = vmatpush3.bf16.msra.mxu1 %v1219_v10 }
  0xa8   :  { %1221 = vmatprep.subr.bf16.mxu1 %v1381_v34 }
  0xa9   :  { %1199 = vmatpush3.bf16.msra.mxu0 %v1198_v52 }
  0xaa   :  { %1200 = vmatprep.subr.bf16.mxu0 %v1381_v34 }
  0xab   :  { %1223 = vmatpush3.bf16.msra.mxu1 %v1222_v22 }
  0xac   :  { %1224 = vmatprep.subr.bf16.mxu1 %v1381_v34  ;;  %v1225_v34 = vpack.c.bf16 %v706_v33, %v705_v32 }
  0xad   :  { %1202 = vmatpush3.bf16.msra.mxu0 %v1201_v55 }
  0xaf   :  { %1226 = vmatpush3.bf16.msra.mxu1 %v1225_v34 }
 0x143   :  { %v839_v13 = vpop.f32.mrb[0].mxu0 }
 0x144   :  { %v874_v14 = vpop.f32.mrb[0].mxu1  ;;  %v840_v15 = vpop.f32.mrb[1].mxu0 }
 0x145   :  { %v841_v16 = vadd.f32 %v840_v15, %v839_v13  ;;  %v875_v17 = vpop.f32.mrb[1].mxu1 }
 0x146   :  { %v876_v18 = vadd.f32 %v875_v17, %v874_v14 }
 0x148   :  { %v444_v19 = vadd.f32 %v876_v18, %v841_v16 }
 0x163   :  { %v909_v20 = vpop.f32.mrb[2].mxu0 }
 0x164   :  { %v910_v21 = vpop.f32.mrb[3].mxu0  ;;  %v944_v23 = vpop.f32.mrb[2].mxu1 }
 0x165   :  { %v911_v24 = vadd.f32 %v910_v21, %v909_v20  ;;  %v945_v25 = vpop.f32.mrb[3].mxu1 }
 0x166   :  { %v946_v26 = vadd.f32 %v945_v25, %v944_v23 }
 0x167   :  { %v514_v27 = vadd.f32 %v911_v24, %v444_v19 }
 0x169   :  { %v584_v29 = vadd.f32 %v946_v26, %v514_v27 }
 0x16b   :  { %v593_v30 = vadd.f32 %v804_v28, %v584_v29 }
 0x16d   :  { %v594_v31 = vmax.f32 %v593_v30, 0.0 }
 0x16f   :  { %1014 = vmatmul.mubr.f32.vlgmr.msra.gmra.mrb[4].mxu0 %v594_v31 }
 0x242   :  { %v678_v36 = vpop.f32.mrb[4].mxu0 }
 0x243   :  { %v688_v37 = vadd.f32 %v805_v35, %v678_v36  ;;  %v1015_v38 = vpop.f32.mrb[5].mxu0 }
 0x245   :  { %v689_v39 = vmax.f32 %v688_v37, 0.0 }
 0x247   :  { %1049 = vmatmul.mubr.f32.vlgmr.msra.gmra.mrb[4].mxu1 %v689_v39 }
 0x31a   :  { %v773_v41 = vpop.f32.mrb[4].mxu1 }
 0x31b   :  { %v783_v42 = vadd.f32 %v806_v40, %v773_v41  ;;  %v1050_v43 = vpop.f32.mrb[5].mxu1 }
 0x31d   :  { %784 = vst [vmem:[#allocation10] sm:$0xff] %v783_v42 }
 0x31e   :  { %789 = vsyncadd [#allocation4], 96  ;;  %s1384_s2 = smov [#allocation10]  }
 0x31f   :  { %s790_s9 = sshll.u32 %s1384_s2, 4  ;;  %s791_s9 = int_to_ptr.vmem [resolvable:$true] %s790_s9 }
 0x320   :  { %s1342_s10 = scalar_lea.vmem %s791_s9, 32  ;;  %s1346_s4 = scalar_lea.vmem %s791_s9, 128 }
 0x321   :  { %p1343_p4 = scmp.ne.s32.totalorder %s791_s9, %s1342_s10  ;;  %p1347_p5 = scmp.lt.s32.totalorder %s791_s9, %s791_s9 }
 0x322   :  { %p1348_p6 = scmp.lt.s32.totalorder %s1346_s4, %s1342_s10 }
 0x324   :  { %p1349_p7 = por %p1348_p6, %p1347_p5 }
 0x326   :  { %p1350_p8 = pnand %p1349_p7, %p1343_p4 }
 0x328   :  { %1353 = shalt.err (!%p1350_p8)
}
 0x329   :  { %s1354_s6 = scalar_lea.hbm %s1545_s7, 32 }
 0x32a   :  { %p1355_p9 = scmp.ne.s32.totalorder %s1545_s7, %s1354_s6  ;;  %p1358_p10 = scmp.lt.u32.totalorder %s1354_s6, %s1545_s7 }
 0x32c   :  { %p1360_p11 = pnand %p1358_p10, %p1355_p9 }
 0x32e   :  { %1363 = shalt.err (!%p1360_p11)
}
 0x32f   :  { %s1385_s0 = smov 32   ;;  %s1386_s16 = smov 2  }
 0x330   :  { %796 = dma.vmem_to_hbm [thread:$0]  %s791_s9, 32, %s1545_s7, [#allocation4], %s1385_s0, %s1385_s0, %s1386_s16  }
 0x331   :  { %1370 = dma.done.wait [#allocation4], 128  }
 0x332   :  { %1371 = vsyncadd [#allocation4], 4294967168 }
 0x333   :  { %800 = vsyncpa [#allocation3], 1 }
 0x334   :  { %801 = vsyncpa [#allocation6], 1 }
 0x335   :  { %802 = vsyncpa [#allocation9], 1 }
 0x336   :  { %803 = vsyncpa [#allocation4], 1 }

// kernel: tpu_custom_call.1
= control target key start
LH: loop header
LB: loop body
LE: loop exit
PB: predicated region body
PF: predicated region fallthrough
CT: control target
= control target key end

     0   :  { %12 = vsyncpa [#allocation3], 0  ;;  %s1538_s0 = inlined_call_operand.hbm [shape: f32[2,1024], index: 0, kind: input, shape index: {}]   ;;  %s1539_s1 = inlined_call_operand.hbm [shape: f32[1024,128], index: 1, kind: input, shape index: {}]   ;;  %s1540_s2 = inlined_call_operand.vmem [shape: f32[1,128], index: 2, kind: input, shape index: {}]   ;;  %s1541_s3 = inlined_call_operand.hbm [shape: f32[128,128], index: 3, kind: input, shape index: {}]   ;;  %s1542_s4 = inlined_call_operand.vmem [shape: f32[1,128], index: 4, kind: input, shape index: {}]   ;;  %s1543_s5 = inlined_call_operand.hbm [shape: f32[128,128], index: 5, kind: input, shape index: {}]   ;;  %s1544_s6 = inlined_call_operand.vmem [shape: f32[1,128], index: 6, kind: input, shape index: {}]   ;;  %s1545_s7 = inlined_call_operand.hbm [shape: f32[2,128], index: 7, kind: output, shape index: {}]  }
   0x1   :  { %13 = vsyncpa [#allocation6], 0 }
   0x2   :  { %14 = vsyncpa [#allocation9], 0 }
   0x3   :  { %15 = vsyncpa [#allocation4], 0 }
   0x4   :  { %20 = vsyncadd [#allocation3], 768  ;;  %s1372_s24 = smov [#allocation5]   ;;  %s1254_s28 = scalar_lea.hbm %s1539_s1, 16384 }
   0x5   :  { %s33_s25 = sshll.u32 %s1372_s24, 4  ;;  %p1255_p0 = scmp.ne.s32.totalorder %s1539_s1, %s1254_s28  ;;  %s34_s25 = int_to_ptr.vmem [resolvable:$true] %s33_s25 }
   0x6   :  { %p1258_p1 = scmp.lt.u32.totalorder %s1254_s28, %s1539_s1 }
   0x8   :  { %p1260_p2 = pnand %p1258_p1, %p1255_p0 }
   0xa   :  { %1263 = shalt.err (!%p1260_p2)
}
   0xb   :  { %s1264_s10 = scalar_lea.vmem %s34_s25, 16384  ;;  %p1269_p4 = scmp.lt.s32.totalorder %s34_s25, %s34_s25 }
   0xc   :  { %p1265_p3 = scmp.ne.s32.totalorder %s34_s25, %s1264_s10  ;;  %p1270_p5 = scmp.lt.s32.totalorder %s1264_s10, %s1264_s10 }
   0xe   :  { %p1271_p6 = por %p1270_p5, %p1269_p4 }
  0x10   :  { %p1272_p7 = pnand %p1271_p6, %p1265_p3 }
  0x12   :  { %1275 = shalt.err (!%p1272_p7)
}
  0x13   :  { %s1373_s11 = smov 128   ;;  %s1374_s12 = smov 8  }
  0x14   :  { %39 = dma.hbm_to_vmem [thread:$0]  %s1539_s1, 16384, %s34_s25, [#allocation6], %s1373_s11, %s1373_s11, %s1374_s12  }
  0x15   :  { %s1375_s15 = smov [#allocation2]   ;;  %s1276_s19 = scalar_lea.hbm %s1538_s0, 256 }
  0x16   :  { %s21_s16 = sshll.u32 %s1375_s15, 4  ;;  %p1277_p8 = scmp.ne.s32.totalorder %s1538_s0, %s1276_s19  ;;  %s22_s16 = int_to_ptr.vmem [resolvable:$true] %s21_s16 }
  0x17   :  { %p1280_p9 = scmp.lt.u32.totalorder %s1276_s19, %s1538_s0 }
  0x19   :  { %p1282_p10 = pnand %p1280_p9, %p1277_p8 }
  0x1b   :  { %1285 = shalt.err (!%p1282_p10)
}
  0x1c   :  { %s1286_s24 = scalar_lea.vmem %s22_s16, 256  ;;  %s1290_s1 = scalar_lea.vmem %s22_s16, 1024 }
  0x1d   :  { %p1287_p11 = scmp.ne.s32.totalorder %s22_s16, %s1286_s24  ;;  %p1291_p12 = scmp.lt.s32.totalorder %s22_s16, %s22_s16 }
  0x1e   :  { %p1292_p13 = scmp.lt.s32.totalorder %s1290_s1, %s1286_s24 }
  0x20   :  { %p1293_p0 = por %p1292_p13, %p1291_p12 }
  0x22   :  { %p1294_p1 = pnand %p1293_p0, %p1287_p11 }
  0x24   :  { %1297 = shalt.err (!%p1294_p1)
}
  0x25   :  { %s1376_s25 = smov 256   ;;  %s1377_s26 = smov 16  }
  0x26   :  { %27 = dma.hbm_to_vmem [thread:$0]  %s1538_s0, 256, %s22_s16, [#allocation3], %s1376_s25, %s1376_s25, %s1377_s26  }
  0x27   :  { %s1378_s29 = smov [#allocation7]   ;;  %s1379_s8 = smov [#allocation8]  }
  0x28   :  { %s47_s30 = sshll.u32 %s1378_s29, 4  ;;  %s61_s9 = sshll.u32 %s1379_s8, 4  ;;  %s48_s30 = int_to_ptr.vmem [resolvable:$true] %s47_s30  ;;  %s1454_s9 = int_to_ptr.vmem [resolvable:$true] %s61_s9 }
  0x29   :  { %s1298_s14 = scalar_lea.hbm %s1541_s3, 2048 }
  0x2a   :  { %p1299_p2 = scmp.ne.s32.totalorder %s1541_s3, %s1298_s14  ;;  %p1302_p3 = scmp.lt.u32.totalorder %s1298_s14, %s1541_s3 }
  0x2c   :  { %p1304_p4 = pnand %p1302_p3, %p1299_p2 }
  0x2e   :  { %1307 = shalt.err (!%p1304_p4)
}
  0x2f   :  { %s1308_s0 = scalar_lea.vmem %s48_s30, 2048  ;;  %p1313_p6 = scmp.lt.s32.totalorder %s48_s30, %s48_s30 }
  0x30   :  { %p1309_p5 = scmp.ne.s32.totalorder %s48_s30, %s1308_s0  ;;  %p1314_p7 = scmp.lt.s32.totalorder %s1308_s0, %s1308_s0 }
  0x32   :  { %p1315_p8 = por %p1314_p7, %p1313_p6 }
  0x34   :  { %p1316_p9 = pnand %p1315_p8, %p1309_p5 }
  0x36   :  { %1319 = shalt.err (!%p1316_p9)
}
  0x37   :  { %53 = dma.hbm_to_vmem [thread:$0]  %s1541_s3, 2048, %s48_s30, [#allocation6], %s1373_s11, %s1373_s11, %s1374_s12  }
  0x38   :  { %s1320_s23 = scalar_lea.hbm %s1543_s5, 2048 }
  0x39   :  { %p1321_p10 = scmp.ne.s32.totalorder %s1543_s5, %s1320_s23  ;;  %p1324_p11 = scmp.lt.u32.totalorder %s1320_s23, %s1543_s5 }
  0x3b   :  { %p1326_p12 = pnand %p1324_p11, %p1321_p10 }
  0x3d   :  { %1329 = shalt.err (!%p1326_p12)
}
  0x3e   :  { %s1330_s27 = scalar_lea.vmem %s1454_s9, 2048  ;;  %p1335_p0 = scmp.lt.s32.totalorder %s1454_s9, %s1454_s9 }
  0x3f   :  { %p1331_p13 = scmp.ne.s32.totalorder %s1454_s9, %s1330_s27  ;;  %p1336_p1 = scmp.lt.s32.totalorder %s1330_s27, %s1330_s27 }
  0x41   :  { %p1337_p2 = por %p1336_p1, %p1335_p0 }
  0x43   :  { %p1338_p3 = pnand %p1337_p2, %p1331_p13 }
  0x45   :  { %1341 = shalt.err (!%p1338_p3)
}
  0x46   :  { %67 = dma.hbm_to_vmem [thread:$0]  %s1543_s5, 2048, %s1454_s9, [#allocation9], %s1373_s11, %s1373_s11, %s1374_s12  }
  0x47   :  { %1364 = dma.done.wait [#allocation3], 1024  }
  0x48   :  { %1365 = vsyncadd [#allocation3], 4294966272 }
  0x49   :  { %1366 = dma.done.wait [#allocation6], 18432  }
  0x4a   :  { %1367 = vsyncadd [#allocation6], 4294948864 }
  0x4b   :  { %1368 = dma.done.wait [#allocation9], 2048  }
  0x4c   :  { %1369 = vsyncadd [#allocation9], 4294965248  ;;  %v107_v0 = vld [vmem:[#allocation5 + $0x80] sm:$0xff]  ;;  %v108_v1 = vld [vmem:[#allocation5 + $0x88] sm:$0xff]  ;;  %v1380_v51 = vmov 1983009808   ;;  %v234_v53 = vlaneseq }
  0x4d   :  { %v139_v2 = vld [vmem:[#allocation5 + $0x180] sm:$0xff]  ;;  %v1051_v3 = vpack.c.bf16 %v108_v1, %v107_v0  ;;  %v140_v4 = vld [vmem:[#allocation5 + $0x188] sm:$0xff]  ;;  %v109_v11 = vld [vmem:[#allocation5 + $0x90] sm:$0xff]  ;;  %v232_v52 = vunpack.c.l.s4 %v1380_v51  ;;  %vm1382_vm0 = vmmov 0  }
  0x4e   :  { %v91_v5 = vld [vmem:[#allocation5] sm:$0xff]  ;;  %v92_v6 = vld [vmem:[#allocation5 + $0x8] sm:$0xff]  ;;  %v1083_v7 = vpack.c.bf16 %v140_v4, %v139_v2  ;;  %v110_v13 = vld [vmem:[#allocation5 + $0x98] sm:$0xff] }
  0x4f   :  { %v1053_v8 = vpack.c.bf16 %v92_v6, %v91_v5  ;;  %v123_v9 = vld [vmem:[#allocation5 + $0x100] sm:$0xff]  ;;  %v124_v10 = vld [vmem:[#allocation5 + $0x108] sm:$0xff]  ;;  %1052 = vmatprep.subr.bf16.mxu0 %v1051_v3  ;;  %v141_v14 = vld [vmem:[#allocation5 + $0x190] sm:$0xff]  ;;  %v1055_v16 = vpack.c.bf16 %v110_v13, %v109_v11  ;;  %v233_v4 = vunpack.c.0.s8 %v232_v52  ;;  %v235_v5 = vshrl.u32 %v234_v53, 7 }
  0x50   :  { %v1085_v12 = vpack.c.bf16 %v124_v10, %v123_v9  ;;  %v142_v15 = vld [vmem:[#allocation5 + $0x198] sm:$0xff]  ;;  %1084 = vmatprep.subr.bf16.mxu1 %v1083_v7  ;;  %v93_v18 = vld [vmem:[#allocation5 + $0x10] sm:$0xff]  ;;  %v111_v23 = vld [vmem:[#allocation5 + $0xa0] sm:$0xff] }
  0x51   :  { %1054 = vmatpush3.bf16.msra.mxu0 %v1053_v8  ;;  %v1087_v17 = vpack.c.bf16 %v142_v15, %v141_v14  ;;  %v94_v19 = vld [vmem:[#allocation5 + $0x18] sm:$0xff]  ;;  %v125_v20 = vld [vmem:[#allocation5 + $0x110] sm:$0xff]  ;;  %v112_v24 = vld [vmem:[#allocation5 + $0xa8] sm:$0xff] }
  0x52   :  { %1086 = vmatpush3.bf16.msra.mxu1 %v1085_v12  ;;  %v1057_v21 = vpack.c.bf16 %v94_v19, %v93_v18  ;;  %v126_v22 = vld [vmem:[#allocation5 + $0x118] sm:$0xff]  ;;  %1056 = vmatprep.subr.bf16.mxu0 %v1055_v16  ;;  %v1059_v26 = vpack.c.bf16 %v112_v24, %v111_v23  ;;  %v143_v27 = vld [vmem:[#allocation5 + $0x1a0] sm:$0xff]  ;;  %v144_v28 = vld [vmem:[#allocation5 + $0x1a8] sm:$0xff] }
  0x53   :  { %1088 = vmatprep.subr.bf16.mxu1 %v1087_v17  ;;  %v1089_v25 = vpack.c.bf16 %v126_v22, %v125_v20  ;;  %v95_v29 = vld [vmem:[#allocation5 + $0x20] sm:$0xff]  ;;  %v1091_v30 = vpack.c.bf16 %v144_v28, %v143_v27  ;;  %v96_v31 = vld [vmem:[#allocation5 + $0x28] sm:$0xff]  ;;  %v113_v35 = vld [vmem:[#allocation5 + $0xb0] sm:$0xff]  ;;  %v1491_v22 = vsub.s32 %v233_v4, %v235_v5 }
  0x54   :  { %v127_v32 = vld [vmem:[#allocation5 + $0x120] sm:$0xff]  ;;  %v128_v33 = vld [vmem:[#allocation5 + $0x128] sm:$0xff]  ;;  %v1061_v34 = vpack.c.bf16 %v96_v31, %v95_v29  ;;  %v114_v36 = vld [vmem:[#allocation5 + $0xb8] sm:$0xff] }
  0x55   :  { %1058 = vmatpush3.bf16.msra.mxu0 %v1057_v21  ;;  %v145_v37 = vld [vmem:[#allocation5 + $0x1b0] sm:$0xff]  ;;  %v1093_v38 = vpack.c.bf16 %v128_v33, %v127_v32  ;;  %v1063_v39 = vpack.c.bf16 %v114_v36, %v113_v35  ;;  %v146_v40 = vld [vmem:[#allocation5 + $0x1b8] sm:$0xff]  ;;  %v115_v46 = vld [vmem:[#allocation5 + $0xc0] sm:$0xff] }
  0x56   :  { %1090 = vmatpush3.bf16.msra.mxu1 %v1089_v25  ;;  %1060 = vmatprep.subr.bf16.mxu0 %v1059_v26  ;;  %v97_v41 = vld [vmem:[#allocation5 + $0x30] sm:$0xff]  ;;  %v98_v42 = vld [vmem:[#allocation5 + $0x38] sm:$0xff]  ;;  %v1095_v43 = vpack.c.bf16 %v146_v40, %v145_v37  ;;  %v116_v47 = vld [vmem:[#allocation5 + $0xc8] sm:$0xff] }
  0x57   :  { %1092 = vmatprep.subr.bf16.mxu1 %v1091_v30  ;;  %v129_v44 = vld [vmem:[#allocation5 + $0x130] sm:$0xff]  ;;  %v130_v45 = vld [vmem:[#allocation5 + $0x138] sm:$0xff]  ;;  %v147_v48 = vld [vmem:[#allocation5 + $0x1c0] sm:$0xff]  ;;  %v1065_v50 = vpack.c.bf16 %v98_v42, %v97_v41  ;;  %v1067_v55 = vpack.c.bf16 %v116_v47, %v115_v46 }
  0x58   :  { %v148_v49 = vld [vmem:[#allocation5 + $0x1c8] sm:$0xff]  ;;  %v1097_v54 = vpack.c.bf16 %v130_v45, %v129_v44  ;;  %v99_v56 = vld [vmem:[#allocation5 + $0x40] sm:$0xff]  ;;  %v117_v61 = vld [vmem:[#allocation5 + $0xd0] sm:$0xff] }
  0x59   :  { %1062 = vmatpush3.bf16.msra.mxu0 %v1061_v34  ;;  %v100_v57 = vld [vmem:[#allocation5 + $0x48] sm:$0xff]  ;;  %v131_v58 = vld [vmem:[#allocation5 + $0x140] sm:$0xff]  ;;  %v1099_v59 = vpack.c.bf16 %v148_v49, %v147_v48  ;;  %v118_v62 = vld [vmem:[#allocation5 + $0xd8] sm:$0xff] }
  0x5a   :  { %1094 = vmatpush3.bf16.msra.mxu1 %v1093_v38  ;;  %1064 = vmatprep.subr.bf16.mxu0 %v1063_v39  ;;  %v132_v60 = vld [vmem:[#allocation5 + $0x148] sm:$0xff]  ;;  %v149_v63 = vld [vmem:[#allocation5 + $0x1d0] sm:$0xff]  ;;  %v150_v0 = vld [vmem:[#allocation5 + $0x1d8] sm:$0xff]  ;;  %v1069_v1 = vpack.c.bf16 %v100_v57, %v99_v56  ;;  %v1071_v7 = vpack.c.bf16 %v118_v62, %v117_v61 }
  0x5b   :  { %1096 = vmatprep.subr.bf16.mxu1 %v1095_v43  ;;  %v101_v2 = vld [vmem:[#allocation5 + $0x50] sm:$0xff]  ;;  %v102_v3 = vld [vmem:[#allocation5 + $0x58] sm:$0xff]  ;;  %v1101_v6 = vpack.c.bf16 %v132_v60, %v131_v58  ;;  %v119_v10 = vld [vmem:[#allocation5 + $0xe0] sm:$0xff]  ;;  %v1103_v11 = vpack.c.bf16 %v150_v0, %v149_v63 }
  0x5c   :  { %v133_v8 = vld [vmem:[#allocation5 + $0x150] sm:$0xff]  ;;  %v134_v9 = vld [vmem:[#allocation5 + $0x158] sm:$0xff]  ;;  %v120_v12 = vld [vmem:[#allocation5 + $0xe8] sm:$0xff]  ;;  %v1073_v18 = vpack.c.bf16 %v102_v3, %v101_v2 }
  0x5d   :  { %1066 = vmatpush3.bf16.msra.mxu0 %v1065_v50  ;;  %v151_v13 = vld [vmem:[#allocation5 + $0x1e0] sm:$0xff]  ;;  %v152_v14 = vld [vmem:[#allocation5 + $0x1e8] sm:$0xff]  ;;  %v121_v20 = vld [vmem:[#allocation5 + $0xf0] sm:$0xff]  ;;  %v1105_v23 = vpack.c.bf16 %v134_v9, %v133_v8  ;;  %v1075_v24 = vpack.c.bf16 %v120_v12, %v119_v10 }
  0x5e   :  { %1098 = vmatpush3.bf16.msra.mxu1 %v1097_v54  ;;  %1068 = vmatprep.subr.bf16.mxu0 %v1067_v55  ;;  %v103_v15 = vld [vmem:[#allocation5 + $0x60] sm:$0xff]  ;;  %v104_v16 = vld [vmem:[#allocation5 + $0x68] sm:$0xff]  ;;  %v122_v21 = vld [vmem:[#allocation5 + $0xf8] sm:$0xff]  ;;  %v1107_v27 = vpack.c.bf16 %v152_v14, %v151_v13 }
  0x5f   :  { %1100 = vmatprep.subr.bf16.mxu1 %v1099_v59  ;;  %v135_v17 = vld [vmem:[#allocation5 + $0x160] sm:$0xff]  ;;  %v136_v19 = vld [vmem:[#allocation5 + $0x168] sm:$0xff]  ;;  %v153_v25 = vld [vmem:[#allocation5 + $0x1f0] sm:$0xff]  ;;  %v1077_v32 = vpack.c.bf16 %v104_v16, %v103_v15  ;;  %v1079_v34 = vpack.c.bf16 %v122_v21, %v121_v20 }
  0x60   :  { %v154_v26 = vld [vmem:[#allocation5 + $0x1f8] sm:$0xff]  ;;  %v1242_v28 = vld [vmem:[#allocation2] ss:$16 sps:$4 sm:$0xff]   ;;  %v1246_v30 = vld [vmem:[#allocation2 + $0x4] ss:$16 sps:$4 sm:$0xff]   ;;  %v1109_v33 = vpack.c.bf16 %v136_v19, %v135_v17 }
  0x61   :  { %1070 = vmatpush3.bf16.msra.mxu0 %v1069_v1  ;;  %v1244_v29 = vld [vmem:[#allocation2 + $0x20] ss:$16 sps:$4 sm:$0xff]   ;;  %v1247_v31 = vld [vmem:[#allocation2 + $0x24] ss:$16 sps:$4 sm:$0xff]   ;;  %v237_v35 = vrot.slane %v1242_v28, %v1491_v22  ;;  %v106_v37 = vld [vmem:[#allocation5 + $0x78] sm:$0xff]  ;;  %v244_v40 = vrot.slane %v1246_v30, %v1491_v22  ;;  %v1111_v42 = vpack.c.bf16 %v154_v26, %v153_v25 }
  0x62   :  { %1102 = vmatpush3.bf16.msra.mxu1 %v1101_v6  ;;  %1072 = vmatprep.subr.bf16.mxu0 %v1071_v7  ;;  %v105_v36 = vld [vmem:[#allocation5 + $0x70] sm:$0xff]  ;;  %v251_v39 = vrot.slane %v1244_v29, %v1491_v22  ;;  %v258_v41 = vrot.slane %v1247_v31, %v1491_v22  ;;  %v138_v43 = vld [vmem:[#allocation5 + $0x178] sm:$0xff]  ;;  %v171_v44 = vld [vmem:[#allocation5 + $0x280] sm:$0xff] }
  0x63   :  { %1104 = vmatprep.subr.bf16.mxu1 %v1103_v11  ;;  %v137_v38 = vld [vmem:[#allocation5 + $0x170] sm:$0xff]  ;;  %v172_v45 = vld [vmem:[#allocation5 + $0x288] sm:$0xff]  ;;  %v203_v48 = vld [vmem:[#allocation5 + $0x380] sm:$0xff]  ;;  %v1081_v50 = vpack.c.bf16 %v106_v37, %v105_v36 }
  0x64   :  { %v260_v46 = vcombine.high %v237_v35, %v251_v39  ;;  %v262_v47 = vcombine.high %v244_v40, %v258_v41  ;;  %v204_v49 = vld [vmem:[#allocation5 + $0x388] sm:$0xff]  ;;  %v1113_v51 = vpack.c.bf16 %v138_v43, %v137_v38  ;;  %v1115_v52 = vpack.c.bf16 %v172_v45, %v171_v44  ;;  %v155_v53 = vld [vmem:[#allocation5 + $0x200] sm:$0xff]  ;;  %v173_v58 = vld [vmem:[#allocation5 + $0x290] sm:$0xff] }
  0x65   :  { %1074 = vmatpush3.bf16.msra.mxu0 %v1073_v18  ;;  %v156_v54 = vld [vmem:[#allocation5 + $0x208] sm:$0xff]  ;;  %v187_v55 = vld [vmem:[#allocation5 + $0x300] sm:$0xff]  ;;  %v1147_v56 = vpack.c.bf16 %v204_v49, %v203_v48  ;;  %v174_v59 = vld [vmem:[#allocation5 + $0x298] sm:$0xff]  ;;  %v259_v60 = vcombine.low %v237_v35, %v251_v39  ;;  %v261_v63 = vcombine.low %v244_v40, %v258_v41 }
  0x66   :  { %1106 = vmatpush3.bf16.msra.mxu1 %v1105_v23  ;;  %1076 = vmatprep.subr.bf16.mxu0 %v1075_v24  ;;  %v188_v57 = vld [vmem:[#allocation5 + $0x308] sm:$0xff]  ;;  %v205_v61 = vld [vmem:[#allocation5 + $0x390] sm:$0xff]  ;;  %v206_v62 = vld [vmem:[#allocation5 + $0x398] sm:$0xff]  ;;  %v1117_v0 = vpack.c.bf16 %v156_v54, %v155_v53  ;;  %v1119_v2 = vpack.c.bf16 %v174_v59, %v173_v58 }
  0x67   :  { %1108 = vmatprep.subr.bf16.mxu1 %v1107_v27  ;;  %371 = vmatprep.mubr.f32.mxu0 %v260_v46  ;;  %v1149_v1 = vpack.c.bf16 %v188_v57, %v187_v55  ;;  %v157_v3 = vld [vmem:[#allocation5 + $0x210] sm:$0xff]  ;;  %v158_v4 = vld [vmem:[#allocation5 + $0x218] sm:$0xff]  ;;  %v1151_v6 = vpack.c.bf16 %v206_v62, %v205_v61  ;;  %v175_v8 = vld [vmem:[#allocation5 + $0x2a0] sm:$0xff] }
  0x68   :  { %441 = vmatprep.mubr.f32.mxu1 %v262_v47  ;;  %v189_v5 = vld [vmem:[#allocation5 + $0x310] sm:$0xff]  ;;  %v190_v7 = vld [vmem:[#allocation5 + $0x318] sm:$0xff]  ;;  %v176_v9 = vld [vmem:[#allocation5 + $0x2a8] sm:$0xff]  ;;  %v1121_v12 = vpack.c.bf16 %v158_v4, %v157_v3 }
  0x69   :  { %1078 = vmatpush3.bf16.msra.mxu0 %v1077_v32  ;;  %v207_v10 = vld [vmem:[#allocation5 + $0x3a0] sm:$0xff]  ;;  %v208_v11 = vld [vmem:[#allocation5 + $0x3a8] sm:$0xff]  ;;  %v1153_v13 = vpack.c.bf16 %v190_v7, %v189_v5  ;;  %v1123_v14 = vpack.c.bf16 %v176_v9, %v175_v8  ;;  %v177_v20 = vld [vmem:[#allocation5 + $0x2b0] sm:$0xff] }
  0x6a   :  { %1110 = vmatpush3.bf16.msra.mxu1 %v1109_v33  ;;  %1080 = vmatprep.subr.bf16.mxu0 %v1079_v34  ;;  %v159_v15 = vld [vmem:[#allocation5 + $0x220] sm:$0xff]  ;;  %v160_v16 = vld [vmem:[#allocation5 + $0x228] sm:$0xff]  ;;  %v1155_v18 = vpack.c.bf16 %v208_v11, %v207_v10  ;;  %v178_v21 = vld [vmem:[#allocation5 + $0x2b8] sm:$0xff] }
  0x6b   :  { %1112 = vmatprep.subr.bf16.mxu1 %v1111_v42  ;;  %v191_v17 = vld [vmem:[#allocation5 + $0x320] sm:$0xff]  ;;  %v192_v19 = vld [vmem:[#allocation5 + $0x328] sm:$0xff]  ;;  %v209_v23 = vld [vmem:[#allocation5 + $0x3b0] sm:$0xff]  ;;  %v1125_v25 = vpack.c.bf16 %v160_v16, %v159_v15  ;;  %v1127_v27 = vpack.c.bf16 %v178_v21, %v177_v20 }
  0x6c   :  { %v210_v24 = vld [vmem:[#allocation5 + $0x3b8] sm:$0xff]  ;;  %v1157_v26 = vpack.c.bf16 %v192_v19, %v191_v17  ;;  %v161_v28 = vld [vmem:[#allocation5 + $0x230] sm:$0xff]  ;;  %v179_v33 = vld [vmem:[#allocation5 + $0x2c0] sm:$0xff] }
  0x6d   :  { %1082 = vmatpush3.bf16.msra.mxu0 %v1081_v50  ;;  %v162_v29 = vld [vmem:[#allocation5 + $0x238] sm:$0xff]  ;;  %v193_v30 = vld [vmem:[#allocation5 + $0x330] sm:$0xff]  ;;  %v1159_v31 = vpack.c.bf16 %v210_v24, %v209_v23  ;;  %v180_v34 = vld [vmem:[#allocation5 + $0x2c8] sm:$0xff] }
  0x6e   :  { %1114 = vmatpush3.bf16.msra.mxu1 %v1113_v51  ;;  %1116 = vmatprep.subr.bf16.mxu0 %v1115_v52  ;;  %v194_v32 = vld [vmem:[#allocation5 + $0x338] sm:$0xff]  ;;  %v163_v35 = vld [vmem:[#allocation5 + $0x240] sm:$0xff]  ;;  %v164_v36 = vld [vmem:[#allocation5 + $0x248] sm:$0xff]  ;;  %v1129_v40 = vpack.c.bf16 %v162_v29, %v161_v28  ;;  %v1131_v45 = vpack.c.bf16 %v180_v34, %v179_v33  ;;  %v1381_v34 = vmov 0.0|0.0  }
  0x6f   :  { %1148 = vmatprep.subr.bf16.mxu1 %v1147_v56  ;;  %v211_v37 = vld [vmem:[#allocation5 + $0x3c0] sm:$0xff]  ;;  %v212_v38 = vld [vmem:[#allocation5 + $0x3c8] sm:$0xff]  ;;  %v181_v42 = vld [vmem:[#allocation5 + $0x2d0] sm:$0xff]  ;;  %v1161_v44 = vpack.c.bf16 %v194_v32, %v193_v30  ;;  %v1133_v53 = vpack.c.bf16 %v164_v36, %v163_v35 }
  0x70   :  { %372 = vmatmul.mubr.f32.vlgmr.msra.gmra.mrb[0].mxu0 %v259_v60  ;;  %v195_v39 = vld [vmem:[#allocation5 + $0x340] sm:$0xff]  ;;  %v196_v41 = vld [vmem:[#allocation5 + $0x348] sm:$0xff]  ;;  %v182_v43 = vld [vmem:[#allocation5 + $0x2d8] sm:$0xff]  ;;  %v1163_v48 = vpack.c.bf16 %v212_v38, %v211_v37 }
  0x71   :  { %442 = vmatmul.mubr.f32.vlgmr.msra.gmra.mrb[0].mxu1 %v261_v63  ;;  %1118 = vmatpush3.bf16.msra.mxu0 %v1117_v0  ;;  %v213_v46 = vld [vmem:[#allocation5 + $0x3d0] sm:$0xff]  ;;  %v214_v47 = vld [vmem:[#allocation5 + $0x3d8] sm:$0xff]  ;;  %v1165_v54 = vpack.c.bf16 %v196_v41, %v195_v39  ;;  %v1135_v55 = vpack.c.bf16 %v182_v43, %v181_v42  ;;  %v215_v3 = vld [vmem:[#allocation5 + $0x3e0] sm:$0xff] }
  0x72   :  { %1150 = vmatpush3.bf16.msra.mxu1 %v1149_v1  ;;  %1120 = vmatprep.subr.bf16.mxu0 %v1119_v2  ;;  %v1248_v49 = vld [vmem:[#allocation2 + $0x8] ss:$16 sps:$4 sm:$0xff]   ;;  %v1252_v51 = vld [vmem:[#allocation2 + $0xc] ss:$16 sps:$4 sm:$0xff]   ;;  %v165_v57 = vld [vmem:[#allocation5 + $0x250] sm:$0xff]  ;;  %v1167_v63 = vpack.c.bf16 %v214_v47, %v213_v46 }
  0x73   :  { %1152 = vmatprep.subr.bf16.mxu1 %v1151_v6  ;;  %v1250_v50 = vld [vmem:[#allocation2 + $0x28] ss:$16 sps:$4 sm:$0xff]   ;;  %v1253_v52 = vld [vmem:[#allocation2 + $0x2c] ss:$16 sps:$4 sm:$0xff]   ;;  %v273_v56 = vrot.slane %v1248_v49, %v1491_v22  ;;  %v197_v59 = vld [vmem:[#allocation5 + $0x350] sm:$0xff]  ;;  %v280_v61 = vrot.slane %v1252_v51, %v1491_v22 }
  0x74   :  { %v166_v58 = vld [vmem:[#allocation5 + $0x258] sm:$0xff]  ;;  %v287_v60 = vrot.slane %v1250_v50, %v1491_v22  ;;  %v294_v62 = vrot.slane %v1253_v52, %v1491_v22  ;;  %v183_v1 = vld [vmem:[#allocation5 + $0x2e0] sm:$0xff]  ;;  %v184_v2 = vld [vmem:[#allocation5 + $0x2e8] sm:$0xff] }
  0x75   :  { %1122 = vmatpush3.bf16.msra.mxu0 %v1121_v12  ;;  %v198_v0 = vld [vmem:[#allocation5 + $0x358] sm:$0xff]  ;;  %v216_v4 = vld [vmem:[#allocation5 + $0x3e8] sm:$0xff]  ;;  %v1137_v7 = vpack.c.bf16 %v166_v58, %v165_v57  ;;  %v1139_v9 = vpack.c.bf16 %v184_v2, %v183_v1  ;;  %v167_v10 = vld [vmem:[#allocation5 + $0x260] sm:$0xff] }
  0x76   :  { %1154 = vmatpush3.bf16.msra.mxu1 %v1153_v13  ;;  %1124 = vmatprep.subr.bf16.mxu0 %v1123_v14  ;;  %v296_v5 = vcombine.high %v273_v56, %v287_v60  ;;  %v298_v6 = vcombine.high %v280_v61, %v294_v62  ;;  %v1169_v8 = vpack.c.bf16 %v198_v0, %v197_v59  ;;  %v168_v11 = vld [vmem:[#allocation5 + $0x268] sm:$0xff]  ;;  %v199_v12 = vld [vmem:[#allocation5 + $0x360] sm:$0xff]  ;;  %v185_v14 = vld [vmem:[#allocation5 + $0x2f0] sm:$0xff] }
  0x77   :  { %1156 = vmatprep.subr.bf16.mxu1 %v1155_v18  ;;  %v1171_v22 = vpack.c.bf16 %v216_v4, %v215_v3  ;;  %v200_v13 = vld [vmem:[#allocation5 + $0x368] sm:$0xff]  ;;  %v186_v15 = vld [vmem:[#allocation5 + $0x2f8] sm:$0xff]  ;;  %v217_v16 = vld [vmem:[#allocation5 + $0x3f0] sm:$0xff]  ;;  %v1141_v18 = vpack.c.bf16 %v168_v11, %v167_v10  ;;  %v295_v29 = vcombine.low %v273_v56, %v287_v60  ;;  %v297_v30 = vcombine.low %v280_v61, %v294_v62 }
  0x78   :  { %511 = vmatprep.mubr.f32.mxu0 %v296_v5  ;;  %v218_v17 = vld [vmem:[#allocation5 + $0x3f8] sm:$0xff]  ;;  %581 = vmatprep.mubr.f32.mxu1 %v298_v6  ;;  %v1173_v19 = vpack.c.bf16 %v200_v13, %v199_v12  ;;  %v1143_v20 = vpack.c.bf16 %v186_v15, %v185_v14  ;;  %v169_v21 = vld [vmem:[#allocation5 + $0x270] sm:$0xff]  ;;  %v597_v32 = vld [vmem:[#allocation7 + $0x8] sm:$0xff]  ;;  %v1383_v56 = vmov 0.0  }
  0x79   :  { %1126 = vmatpush3.bf16.msra.mxu0 %v1125_v25  ;;  %v170_v23 = vld [vmem:[#allocation5 + $0x278] sm:$0xff]  ;;  %v1175_v24 = vpack.c.bf16 %v218_v17, %v217_v16  ;;  %v201_v25 = vld [vmem:[#allocation5 + $0x370] sm:$0xff]  ;;  %v600_v38 = vld [vmem:[#allocation7 + $0x20] sm:$0xff] }
  0x7a   :  { %1158 = vmatpush3.bf16.msra.mxu1 %v1157_v26  ;;  %1128 = vmatprep.subr.bf16.mxu0 %v1127_v27  ;;  %v202_v26 = vld [vmem:[#allocation5 + $0x378] sm:$0xff]  ;;  %v1145_v27 = vpack.c.bf16 %v170_v23, %v169_v21  ;;  %v598_v33 = vld [vmem:[#allocation7 + $0x10] sm:$0xff]  ;;  %v601_v39 = vld [vmem:[#allocation7 + $0x28] sm:$0xff] }
  0x7b   :  { %1160 = vmatprep.subr.bf16.mxu1 %v1159_v31  ;;  %v1177_v28 = vpack.c.bf16 %v202_v26, %v201_v25  ;;  %v596_v31 = vld [vmem:[#allocation7] sm:$0xff]  ;;  %v599_v36 = vld [vmem:[#allocation7 + $0x18] sm:$0xff]  ;;  %v602_v41 = vld [vmem:[#allocation7 + $0x30] sm:$0xff] }
  0x7c   :  { %v1180_v35 = vpack.c.bf16 %v597_v32, %v596_v31  ;;  %v1183_v37 = vpack.c.bf16 %v599_v36, %v598_v33  ;;  %v603_v42 = vld [vmem:[#allocation7 + $0x38] sm:$0xff]  ;;  %v606_v47 = vld [vmem:[#allocation7 + $0x50] sm:$0xff]  ;;  %v608_v50 = vld [vmem:[#allocation7 + $0x60] sm:$0xff] }
  0x7d   :  { %1130 = vmatpush3.bf16.msra.mxu0 %v1129_v40  ;;  %v1186_v40 = vpack.c.bf16 %v601_v39, %v600_v38  ;;  %v1189_v43 = vpack.c.bf16 %v603_v42, %v602_v41  ;;  %v609_v51 = vld [vmem:[#allocation7 + $0x68] sm:$0xff]  ;;  %v691_v57 = vld [vmem:[#allocation8] sm:$0xff]  ;;  %v693_v59 = vld [vmem:[#allocation8 + $0x10] sm:$0xff] }
  0x7e   :  { %1162 = vmatpush3.bf16.msra.mxu1 %v1161_v44  ;;  %1132 = vmatprep.subr.bf16.mxu0 %v1131_v45  ;;  %v604_v44 = vld [vmem:[#allocation7 + $0x40] sm:$0xff]  ;;  %v605_v45 = vld [vmem:[#allocation7 + $0x48] sm:$0xff]  ;;  %v1198_v52 = vpack.c.bf16 %v609_v51, %v608_v50  ;;  %v694_v61 = vld [vmem:[#allocation8 + $0x18] sm:$0xff] }
  0x7f   :  { %1164 = vmatprep.subr.bf16.mxu1 %v1163_v48  ;;  %v1192_v46 = vpack.c.bf16 %v605_v45, %v604_v44  ;;  %v607_v48 = vld [vmem:[#allocation7 + $0x58] sm:$0xff]  ;;  %v692_v58 = vld [vmem:[#allocation8 + $0x8] sm:$0xff]  ;;  %v1207_v62 = vpack.c.bf16 %v694_v61, %v693_v59  ;;  %v697_v2 = vld [vmem:[#allocation8 + $0x30] sm:$0xff] }
  0x80   :  { %v1195_v49 = vpack.c.bf16 %v607_v48, %v606_v47  ;;  %v1204_v60 = vpack.c.bf16 %v692_v58, %v691_v57  ;;  %v696_v0 = vld [vmem:[#allocation8 + $0x28] sm:$0xff]  ;;  %v698_v3 = vld [vmem:[#allocation8 + $0x38] sm:$0xff]  ;;  %v699_v5 = vld [vmem:[#allocation8 + $0x40] sm:$0xff] }
  0x81   :  { %1134 = vmatpush3.bf16.msra.mxu0 %v1133_v53  ;;  %v610_v53 = vld [vmem:[#allocation7 + $0x70] sm:$0xff]  ;;  %v1213_v4 = vpack.c.bf16 %v698_v3, %v697_v2  ;;  %v700_v6 = vld [vmem:[#allocation8 + $0x48] sm:$0xff]  ;;  %v703_v11 = vld [vmem:[#allocation8 + $0x60] sm:$0xff] }
  0x82   :  { %1166 = vmatpush3.bf16.msra.mxu1 %v1165_v54  ;;  %1136 = vmatprep.subr.bf16.mxu0 %v1135_v55  ;;  %v611_v54 = vld [vmem:[#allocation7 + $0x78] sm:$0xff]  ;;  %v704_v12 = vld [vmem:[#allocation8 + $0x68] sm:$0xff]  ;;  %v705_v32 = vld [vmem:[#allocation8 + $0x70] sm:$0xff] }
  0x83   :  { %1168 = vmatprep.subr.bf16.mxu1 %v1167_v63  ;;  %v1201_v55 = vpack.c.bf16 %v611_v54, %v610_v53  ;;  %v695_v63 = vld [vmem:[#allocation8 + $0x20] sm:$0xff]  ;;  %v706_v33 = vld [vmem:[#allocation8 + $0x78] sm:$0xff] }
  0x84   :  { %v1210_v1 = vpack.c.bf16 %v696_v0, %v695_v63 }
  0x85   :  { %1138 = vmatpush3.bf16.msra.mxu0 %v1137_v7  ;;  %v1216_v7 = vpack.c.bf16 %v700_v6, %v699_v5 }
  0x86   :  { %1170 = vmatpush3.bf16.msra.mxu1 %v1169_v8  ;;  %1140 = vmatprep.subr.bf16.mxu0 %v1139_v9  ;;  %v701_v8 = vld [vmem:[#allocation8 + $0x50] sm:$0xff]  ;;  %v702_v9 = vld [vmem:[#allocation8 + $0x58] sm:$0xff] }
  0x87   :  { %1172 = vmatprep.subr.bf16.mxu1 %v1171_v22  ;;  %v1219_v10 = vpack.c.bf16 %v702_v9, %v701_v8  ;;  %v1222_v22 = vpack.c.bf16 %v704_v12, %v703_v11 }
  0x89   :  { %1142 = vmatpush3.bf16.msra.mxu0 %v1141_v18 }
  0x8a   :  { %1174 = vmatpush3.bf16.msra.mxu1 %v1173_v19  ;;  %1144 = vmatprep.subr.bf16.mxu0 %v1143_v20 }
  0x8b   :  { %1176 = vmatprep.subr.bf16.mxu1 %v1175_v24 }
  0x8d   :  { %1146 = vmatpush3.bf16.msra.mxu0 %v1145_v27 }
  0x8e   :  { %1178 = vmatpush3.bf16.msra.mxu1 %v1177_v28  ;;  %1179 = vmatprep.subr.bf16.mxu0 %v1381_v34  ;;  %v804_v28 = vld [vmem:[%s1540_s2] ss:$0 sm:$0xff] }
  0x8f   :  { %1203 = vmatprep.subr.bf16.mxu1 %v1381_v34 }
  0x90   :  { %512 = vmatmul.mubr.f32.vlgmr.msra.gmra.mrb[2].mxu0 %v295_v29 }
  0x91   :  { %582 = vmatmul.mubr.f32.vlgmr.msra.gmra.mrb[2].mxu1 %v297_v30  ;;  %1181 = vmatpush3.bf16.msra.mxu0 %v1180_v35  ;;  %v805_v35 = vld [vmem:[%s1542_s4] ss:$0 sm:$0xff] }
  0x92   :  { %1182 = vmatprep.subr.bf16.mxu0 %v1381_v34  ;;  %1013 = vmatprep.mubr.msk.f32.mxu0 %vm1382_vm0, %v1383_v56 }
  0x93   :  { %1048 = vmatprep.mubr.msk.f32.mxu1 %vm1382_vm0, %v1383_v56  ;;  %1205 = vmatpush3.bf16.msra.mxu1 %v1204_v60 }
  0x94   :  { %1206 = vmatprep.subr.bf16.mxu1 %v1381_v34 }
  0x95   :  { %1184 = vmatpush3.bf16.msra.mxu0 %v1183_v37 }
  0x96   :  { %1185 = vmatprep.subr.bf16.mxu0 %v1381_v34 }
  0x97   :  { %1208 = vmatpush3.bf16.msra.mxu1 %v1207_v62 }
  0x98   :  { %1209 = vmatprep.subr.bf16.mxu1 %v1381_v34 }
  0x99   :  { %1187 = vmatpush3.bf16.msra.mxu0 %v1186_v40  ;;  %v806_v40 = vld [vmem:[%s1544_s6] ss:$0 sm:$0xff] }
  0x9a   :  { %1188 = vmatprep.subr.bf16.mxu0 %v1381_v34 }
  0x9b   :  { %1211 = vmatpush3.bf16.msra.mxu1 %v1210_v1 }
  0x9c   :  { %1212 = vmatprep.subr.bf16.mxu1 %v1381_v34 }
  0x9d   :  { %1190 = vmatpush3.bf16.msra.mxu0 %v1189_v43 }
  0x9e   :  { %1191 = vmatprep.subr.bf16.mxu0 %v1381_v34 }
  0x9f   :  { %1214 = vmatpush3.bf16.msra.mxu1 %v1213_v4 }
  0xa0   :  { %1215 = vmatprep.subr.bf16.mxu1 %v1381_v34 }
  0xa1   :  { %1193 = vmatpush3.bf16.msra.mxu0 %v1192_v46 }
  0xa2   :  { %1194 = vmatprep.subr.bf16.mxu0 %v1381_v34 }
  0xa3   :  { %1217 = vmatpush3.bf16.msra.mxu1 %v1216_v7 }
  0xa4   :  { %1218 = vmatprep.subr.bf16.mxu1 %v1381_v34 }
  0xa5   :  { %1196 = vmatpush3.bf16.msra.mxu0 %v1195_v49 }
  0xa6   :  { %1197 = vmatprep.subr.bf16.mxu0 %v1381_v34 }
  0xa7   :  { %1220 = vmatpush3.bf16.msra.mxu1 %v1219_v10 }
  0xa8   :  { %1221 = vmatprep.subr.bf16.mxu1 %v1381_v34 }
  0xa9   :  { %1199 = vmatpush3.bf16.msra.mxu0 %v1198_v52 }
  0xaa   :  { %1200 = vmatprep.subr.bf16.mxu0 %v1381_v34 }
  0xab   :  { %1223 = vmatpush3.bf16.msra.mxu1 %v1222_v22 }
  0xac   :  { %1224 = vmatprep.subr.bf16.mxu1 %v1381_v34  ;;  %v1225_v34 = vpack.c.bf16 %v706_v33, %v705_v32 }
  0xad   :  { %1202 = vmatpush3.bf16.msra.mxu0 %v1201_v55 }
  0xaf   :  { %1226 = vmatpush3.bf16.msra.mxu1 %v1225_v34 }
 0x143   :  { %v839_v13 = vpop.f32.mrb[0].mxu0 }
 0x144   :  { %v874_v14 = vpop.f32.mrb[0].mxu1  ;;  %v840_v15 = vpop.f32.mrb[1].mxu0 }
 0x145   :  { %v841_v16 = vadd.f32 %v840_v15, %v839_v13  ;;  %v875_v17 = vpop.f32.mrb[1].mxu1 }
 0x146   :  { %v876_v18 = vadd.f32 %v875_v17, %v874_v14 }
 0x148   :  { %v444_v19 = vadd.f32 %v876_v18, %v841_v16 }
 0x163   :  { %v909_v20 = vpop.f32.mrb[2].mxu0 }
 0x164   :  { %v910_v21 = vpop.f32.mrb[3].mxu0  ;;  %v944_v23 = vpop.f32.mrb[2].mxu1 }
 0x165   :  { %v911_v24 = vadd.f32 %v910_v21, %v909_v20  ;;  %v945_v25 = vpop.f32.mrb[3].mxu1 }
 0x166   :  { %v946_v26 = vadd.f32 %v945_v25, %v944_v23 }
 0x167   :  { %v514_v27 = vadd.f32 %v911_v24, %v444_v19 }
 0x169   :  { %v584_v29 = vadd.f32 %v946_v26, %v514_v27 }
 0x16b   :  { %v593_v30 = vadd.f32 %v804_v28, %v584_v29 }
 0x16d   :  { %v594_v31 = vmax.f32 %v593_v30, 0.0 }
 0x16f   :  { %1014 = vmatmul.mubr.f32.vlgmr.msra.gmra.mrb[4].mxu0 %v594_v31 }
 0x242   :  { %v678_v36 = vpop.f32.mrb[4].mxu0 }
 0x243   :  { %v688_v37 = vadd.f32 %v805_v35, %v678_v36  ;;  %v1015_v38 = vpop.f32.mrb[5].mxu0 }
 0x245   :  { %v689_v39 = vmax.f32 %v688_v37, 0.0 }
 0x247   :  { %1049 = vmatmul.mubr.f32.vlgmr.msra.gmra.mrb[4].mxu1 %v689_v39 }
 0x31a   :  { %v773_v41 = vpop.f32.mrb[4].mxu1 }
 0x31b   :  { %v783_v42 = vadd.f32 %v806_v40, %v773_v41  ;;  %v1050_v43 = vpop.f32.mrb[5].mxu1 }
 0x31d   :  { %784 = vst [vmem:[#allocation10] sm:$0xff] %v783_v42 }
 0x31e   :  { %789 = vsyncadd [#allocation4], 96  ;;  %s1384_s2 = smov [#allocation10]  }
 0x31f   :  { %s790_s9 = sshll.u32 %s1384_s2, 4  ;;  %s791_s9 = int_to_ptr.vmem [resolvable:$true] %s790_s9 }
 0x320   :  { %s1342_s10 = scalar_lea.vmem %s791_s9, 32  ;;  %s1346_s4 = scalar_lea.vmem %s791_s9, 128 }
 0x321   :  { %p1343_p4 = scmp.ne.s32.totalorder %s791_s9, %s1342_s10  ;;  %p1347_p5 = scmp.lt.s32.totalorder %s791_s9, %s791_s9 }
 0x322   :  { %p1348_p6 = scmp.lt.s32.totalorder %s1346_s4, %s1342_s10 }
 0x324   :  { %p1349_p7 = por %p1348_p6, %p1347_p5 }
 0x326   :  { %p1350_p8 = pnand %p1349_p7, %p1343_p4 }
 0x328   :  { %1353 = shalt.err (!%p1350_p8)
}
 0x329   :  { %s1354_s6 = scalar_lea.hbm %s1545_s7, 32 }
 0x32a   :  { %p1355_p9 = scmp.ne.s32.totalorder %s1545_s7, %s1354_s6  ;;  %p1358_p10 = scmp.lt.u32.totalorder %s1354_s6, %s1545_s7 }
 0x32c   :  { %p1360_p11 = pnand %p1358_p10, %p1355_p9 }
 0x32e   :  { %1363 = shalt.err (!%p1360_p11)
}
 0x32f   :  { %s1385_s0 = smov 32   ;;  %s1386_s16 = smov 2  }
 0x330   :  { %796 = dma.vmem_to_hbm [thread:$0]  %s791_s9, 32, %s1545_s7, [#allocation4], %s1385_s0, %s1385_s0, %s1386_s16  }
 0x331   :  { %1370 = dma.done.wait [#allocation4], 128  }
 0x332   :  { %1371 = vsyncadd [#allocation4], 4294967168 }
 0x333   :  { %800 = vsyncpa [#allocation3], 1 }
 0x334   :  { %801 = vsyncpa [#allocation6], 1 }
 0x335   :  { %802 = vsyncpa [#allocation9], 1 }
 0x336   :  { %803 = vsyncpa [#allocation4], 1 }

</bundles_post_ra>
